<compile_context>
chip_gen: v7x
topology: tpu7x:2x2x1
jax: 0.10.0
libtpu: 0.0.40
codegen_flags: <defaults>
</compile_context>

<pallas_src>
import numpy as np
import jax
import jax.numpy as jnp
from jax.experimental import pallas as pl
from jax.experimental.pallas import tpu as pltpu

IMAGE = 15      # image_size
H = 6           # h_dim
Z = 2           # z_dim

LANE = 128
WROWS = 16                     # sublane rows per packed weight block (max fan_in = 15)
NBLK = 7                       # number of (fused) linear layers in the packed slab
BIAS_ROW0 = NBLK * WROWS       # 112: first bias row
P_ROWS = BIAS_ROW0 + 8         # 120: biases padded to a full 8-sublane tile
MU_OFF = 16                    # lane offset of mu|logvar in the bottleneck/output slab


# ----------------------------------------------------------------------------
# Pallas kernel factory: full VAE forward (encoder -> bottleneck -> decoder).
# ----------------------------------------------------------------------------
def make_vae_kernel(TB, use_mxu):
    def kernel(x_ref, eps_ref, p_ref, out_ref):
        # Hoist all bias rows with one aligned (8,128) load.
        biases = p_ref[BIAS_ROW0:BIAS_ROW0 + 8, :]

        def bias(i):
            return biases[i:i + 1, :]                         # (1,128), bcast in add

        def wrow(r):
            # TODO(synk): a stride-0 sublane-broadcast load (pl.ds(r, TB, stride=0))
            # would move this sublane broadcast onto the idle vld slots.
            return p_ref[r:r + 1, :]                          # (1,128)

        def dense_vpu(cols, blk):
            # cols: list of (TB,1) activation columns (lane-broadcast on multiply).
            acc = bias(blk)
            for k, c in enumerate(cols):
                acc = acc + c * wrow(blk * WROWS + k)
            return acc                                        # (TB,128)

        def dense_mxu(h, blk):
            w = p_ref[blk * WROWS:(blk + 1) * WROWS, :]       # (16,128)
            return jnp.dot(h[:, 0:WROWS], w,
                           preferred_element_type=jnp.float32) + bias(blk)

        def dense(h, blk):
            if use_mxu:                                       # batched path: MXU
                return dense_mxu(h, blk)
            return dense_vpu([h[:, k:k + 1] for k in range(H)], blk)

        x = x_ref[...]                                        # (TB, IMAGE)

        # ---- encoder: 3 x (Linear -> Sin). Layer 0 (fan_in=15) always on the VPU
        # so the natural-width (TB,15) input never needs padding to 16 lanes. -----
        h = jnp.sin(dense_vpu([x[:, k:k + 1] for k in range(IMAGE)], 0))
        h = jnp.sin(dense(h, 1))
        h = jnp.sin(dense(h, 2))

        # ---- bottleneck: fused [fc1 | fc2]; outputs land in lanes 16:20 --------
        ml = dense(h, 3)                                      # mu: 16:18, logvar: 18:20
        mu = ml[:, MU_OFF:MU_OFF + Z]
        logvar = ml[:, MU_OFF + Z:MU_OFF + 2 * Z]
        z = mu + jnp.exp(0.5 * logvar) * eps_ref[...]         # (TB, 2)

        # ---- fused fc3 + decoder Linear #1: K=2 -> VPU (no MXU pass) -----------
        d = jnp.sin(dense_vpu([z[:, 0:1], z[:, 1:2]], 4))

        # ---- decoder: Linear -> Sin -> Linear -> Sigmoid ------------------------
        d = jnp.sin(dense(d, 5))
        d = jax.nn.sigmoid(dense(d, 6))                       # recon in lanes 0:IMAGE

        # ---- epilogue: in-register blend, one full-width unmasked store ---------
        lanes = jax.lax.broadcasted_iota(jnp.int32, (TB, LANE), 1)
        keep_ml = (lanes >= MU_OFF) & (lanes < MU_OFF + 2 * Z)
        out_ref[...] = jnp.where(keep_ml, ml, d)

    return kernel


# ----------------------------------------------------------------------------
# Parameter construction (PyTorch-default-style uniform init) + offline fusion.
# ----------------------------------------------------------------------------
def init_params(key):
    def lin(k, fan_in, fan_out):
        kw, kb = jax.random.split(k)
        s = 1.0 / np.sqrt(fan_in)
        w = np.asarray(jax.random.uniform(kw, (fan_in, fan_out), jnp.float32, -s, s))
        b = np.asarray(jax.random.uniform(kb, (fan_out,), jnp.float32, -s, s))
        return w, b

    ks = jax.random.split(key, 9)
    we1, be1 = lin(ks[0], IMAGE, H)
    we2, be2 = lin(ks[1], H, H)
    we3, be3 = lin(ks[2], H, H)
    wf1, bf1 = lin(ks[3], H, Z)
    wf2, bf2 = lin(ks[4], H, Z)
    wf3, bf3 = lin(ks[5], Z, H)
    wd1, bd1 = lin(ks[6], H, H)
    wd2, bd2 = lin(ks[7], H, H)
    wd3, bd3 = lin(ks[8], H, IMAGE)

    raw = dict(we1=we1, be1=be1, we2=we2, be2=be2, we3=we3, be3=be3,
               wf1=wf1, bf1=bf1, wf2=wf2, bf2=bf2, wf3=wf3, bf3=bf3,
               wd1=wd1, bd1=bd1, wd2=wd2, bd2=bd2, wd3=wd3, bd3=bd3)

    # Offline fusions (differ from the unfused model only at f32 rounding level):
    w12 = np.concatenate([wf1, wf2], axis=1)             # (H, 2Z): [mu | logvar]
    b12 = np.concatenate([bf1, bf2])                     # (2Z,)
    wfd = wf3 @ wd1                                      # (Z, H): fc3 ∘ decoder Linear #1
    bfd = bf3 @ wd1 + bd1                                # (H,)

    # (weights, bias, lane offset of the block's outputs)
    blocks = [(we1, be1, 0), (we2, be2, 0), (we3, be3, 0),
              (w12, b12, MU_OFF), (wfd, bfd, 0), (wd2, bd2, 0), (wd3, bd3, 0)]

    slab = np.zeros((P_ROWS, LANE), np.float32)
    for i, (w, b, off) in enumerate(blocks):
        r, c = w.shape
        slab[i * WROWS:i * WROWS + r, off:off + c] = w
        slab[BIAS_ROW0 + i, off:off + b.shape[0]] = b
    return jnp.asarray(slab), raw


# ----------------------------------------------------------------------------
# Pure-JAX reference (un-fused) for correctness checking.
# ----------------------------------------------------------------------------
def ref_forward(x, eps, p):
    h = jnp.sin(x @ p["we1"] + p["be1"])
    h = jnp.sin(h @ p["we2"] + p["be2"])
    h = jnp.sin(h @ p["we3"] + p["be3"])
    mu = h @ p["wf1"] + p["bf1"]
    logvar = h @ p["wf2"] + p["bf2"]
    z = mu + jnp.exp(0.5 * logvar) * eps
    d = z @ p["wf3"] + p["bf3"]
    d = jnp.sin(d @ p["wd1"] + p["bd1"])
    d = jnp.sin(d @ p["wd2"] + p["bd2"])
    recon = jax.nn.sigmoid(d @ p["wd3"] + p["bd3"])
    return recon, mu, logvar


# ----------------------------------------------------------------------------
# Wrapper
# ----------------------------------------------------------------------------
@jax.jit
def vae_forward(x, eps, p_slab):
    """x: (B, IMAGE), eps: (B, Z) -> (recon (B, IMAGE), mu (B, Z), logvar (B, Z))."""
    B = x.shape[0]
    assert B % 8 == 0, "batch must be a multiple of the sublane tile (8)"
    TB = B if B <= 256 else 256
    assert B % TB == 0, "batch must be a multiple of the batch tile"
    use_mxu = TB >= 128                     # VPU dense path for the small-B latency case

    out = pl.pallas_call(
        make_vae_kernel(TB, use_mxu),
        out_shape=jax.ShapeDtypeStruct((B, LANE), jnp.float32),
        grid_spec=pltpu.PrefetchScalarGridSpec(
            num_scalar_prefetch=0,
            grid=(B // TB,),
            in_specs=[
                pl.BlockSpec((TB, IMAGE), lambda i: (i, 0)),       # x, natural width
                pl.BlockSpec((TB, Z), lambda i: (i, 0)),           # eps, natural width
                pl.BlockSpec((P_ROWS, LANE), lambda i: (0, 0)),    # param slab, resident
            ],
            out_specs=pl.BlockSpec((TB, LANE), lambda i: (i, 0)),
        ),
        compiler_params=pltpu.CompilerParams(
            dimension_semantics=("parallel",)),                    # v7x: 2 TCs share batch
    )(x.astype(jnp.float32), eps.astype(jnp.float32), p_slab)

    recon = out[:, 0:IMAGE]
    mu = out[:, MU_OFF:MU_OFF + Z]
    logvar = out[:, MU_OFF + Z:MU_OFF + 2 * Z]
    return recon, mu, logvar


def _check(got, want, B, rtol=1e-4, atol=1e-5):
    recon, mu, logvar = got
    assert recon.shape == (B, IMAGE) and mu.shape == (B, Z) and logvar.shape == (B, Z)
    assert bool(jnp.all(jnp.isfinite(recon)))
    for g, w in zip(got, want):
        np.testing.assert_allclose(np.asarray(g), np.asarray(w), rtol=rtol, atol=atol)


if __name__ == "__main__":
    key = jax.random.PRNGKey(0)
    k_param, k_x, k_eps = jax.random.split(key, 3)
    p_slab, raw = init_params(k_param)

    # ---- small-batch latency path: VPU dense layers, grid=(1,) -----------------
    B1 = 8
    x1 = jax.random.uniform(k_x, (B1, IMAGE), jnp.float32)
    eps1 = jax.random.normal(k_eps, (B1, Z), jnp.float32)
    out1 = vae_forward(x1, eps1, p_slab)
    jax.block_until_ready(out1)
    _check(out1, ref_forward(x1, eps1, raw), B1)

    # ---- batched throughput path: MXU dense layers, grid over batch ------------
    B2 = 512
    x2 = jax.random.uniform(jax.random.fold_in(k_x, 1), (B2, IMAGE), jnp.float32)
    eps2 = jax.random.normal(jax.random.fold_in(k_eps, 1), (B2, Z), jnp.float32)
    out2 = vae_forward(x2, eps2, p_slab)
    jax.block_until_ready(out2)
    _check(out2, ref_forward(x2, eps2, raw), B2)

    print("KERNEL_OK")
</pallas_src>

<mosaic_0001>
module attributes {stable_mosaic.version = 11 : i64} {
  func.func @kernel(%arg0: i32, %arg1: memref<8x15xf32, #tpu.memory_space<vmem>>, %arg2: memref<8x2xf32, #tpu.memory_space<vmem>>, %arg3: memref<120x128xf32, #tpu.memory_space<vmem>>, %arg4: memref<8x128xf32, #tpu.memory_space<vmem>>) attributes {dimension_semantics = [#tpu.dimension_semantics<parallel>], iteration_bounds = array<i64: 1>, scalar_prefetch = 0 : i64, scratch_operands = 0 : i64, tpu.core_type = #tpu.core_type<tc>, window_params = [{transform_indices = @transform_0, window_bounds = array<i64: 8, 15>}, {transform_indices = @transform_1, window_bounds = array<i64: 8, 2>}, {pipeline_mode = #tpu.pipeline_mode<synchronous>, transform_indices = @transform_2, window_bounds = array<i64: 120, 128>}, {transform_indices = @transform_3, window_bounds = array<i64: 8, 128>}]} {
    %c112 = arith.constant 112 : index
    %c0 = arith.constant 0 : index
    %0 = vector.load %arg3[%c112, %c0] : memref<120x128xf32, #tpu.memory_space<vmem>>, vector<8x128xf32>
    %c0_0 = arith.constant 0 : index
    %c0_1 = arith.constant 0 : index
    %1 = vector.load %arg1[%c0_0, %c0_1] : memref<8x15xf32, #tpu.memory_space<vmem>>, vector<8x15xf32>
    %2 = vector.extract_strided_slice %1 {offsets = [0, 0], sizes = [8, 1], strides = [1, 1]} : vector<8x15xf32> to vector<8x1xf32>
    %3 = vector.extract_strided_slice %1 {offsets = [0, 1], sizes = [8, 1], strides = [1, 1]} : vector<8x15xf32> to vector<8x1xf32>
    %4 = vector.extract_strided_slice %1 {offsets = [0, 2], sizes = [8, 1], strides = [1, 1]} : vector<8x15xf32> to vector<8x1xf32>
    %5 = vector.extract_strided_slice %1 {offsets = [0, 3], sizes = [8, 1], strides = [1, 1]} : vector<8x15xf32> to vector<8x1xf32>
    %6 = vector.extract_strided_slice %1 {offsets = [0, 4], sizes = [8, 1], strides = [1, 1]} : vector<8x15xf32> to vector<8x1xf32>
    %7 = vector.extract_strided_slice %1 {offsets = [0, 5], sizes = [8, 1], strides = [1, 1]} : vector<8x15xf32> to vector<8x1xf32>
    %8 = vector.extract_strided_slice %1 {offsets = [0, 6], sizes = [8, 1], strides = [1, 1]} : vector<8x15xf32> to vector<8x1xf32>
    %9 = vector.extract_strided_slice %1 {offsets = [0, 7], sizes = [8, 1], strides = [1, 1]} : vector<8x15xf32> to vector<8x1xf32>
    %10 = vector.extract_strided_slice %1 {offsets = [0, 8], sizes = [8, 1], strides = [1, 1]} : vector<8x15xf32> to vector<8x1xf32>
    %11 = vector.extract_strided_slice %1 {offsets = [0, 9], sizes = [8, 1], strides = [1, 1]} : vector<8x15xf32> to vector<8x1xf32>
    %12 = vector.extract_strided_slice %1 {offsets = [0, 10], sizes = [8, 1], strides = [1, 1]} : vector<8x15xf32> to vector<8x1xf32>
    %13 = vector.extract_strided_slice %1 {offsets = [0, 11], sizes = [8, 1], strides = [1, 1]} : vector<8x15xf32> to vector<8x1xf32>
    %14 = vector.extract_strided_slice %1 {offsets = [0, 12], sizes = [8, 1], strides = [1, 1]} : vector<8x15xf32> to vector<8x1xf32>
    %15 = vector.extract_strided_slice %1 {offsets = [0, 13], sizes = [8, 1], strides = [1, 1]} : vector<8x15xf32> to vector<8x1xf32>
    %16 = vector.extract_strided_slice %1 {offsets = [0, 14], sizes = [8, 1], strides = [1, 1]} : vector<8x15xf32> to vector<8x1xf32>
    %17 = vector.extract_strided_slice %0 {offsets = [0, 0], sizes = [1, 128], strides = [1, 1]} : vector<8x128xf32> to vector<1x128xf32>
    %c0_2 = arith.constant 0 : index
    %c0_3 = arith.constant 0 : index
    %18 = vector.load %arg3[%c0_2, %c0_3] : memref<120x128xf32, #tpu.memory_space<vmem>>, vector<1x128xf32>
    %19 = vector.broadcast %2 : vector<8x1xf32> to vector<8x128xf32>
    %20 = vector.broadcast %18 : vector<1x128xf32> to vector<8x128xf32>
    %21 = arith.mulf %19, %20 : vector<8x128xf32>
    %22 = vector.broadcast %17 : vector<1x128xf32> to vector<8x128xf32>
    %23 = arith.addf %22, %21 : vector<8x128xf32>
    %c1 = arith.constant 1 : index
    %c0_4 = arith.constant 0 : index
    %24 = vector.load %arg3[%c1, %c0_4] : memref<120x128xf32, #tpu.memory_space<vmem>>, vector<1x128xf32>
    %25 = vector.broadcast %3 : vector<8x1xf32> to vector<8x128xf32>
    %26 = vector.broadcast %24 : vector<1x128xf32> to vector<8x128xf32>
    %27 = arith.mulf %25, %26 : vector<8x128xf32>
    %28 = arith.addf %23, %27 : vector<8x128xf32>
    %c2 = arith.constant 2 : index
    %c0_5 = arith.constant 0 : index
    %29 = vector.load %arg3[%c2, %c0_5] : memref<120x128xf32, #tpu.memory_space<vmem>>, vector<1x128xf32>
    %30 = vector.broadcast %4 : vector<8x1xf32> to vector<8x128xf32>
    %31 = vector.broadcast %29 : vector<1x128xf32> to vector<8x128xf32>
    %32 = arith.mulf %30, %31 : vector<8x128xf32>
    %33 = arith.addf %28, %32 : vector<8x128xf32>
    %c3 = arith.constant 3 : index
    %c0_6 = arith.constant 0 : index
    %34 = vector.load %arg3[%c3, %c0_6] : memref<120x128xf32, #tpu.memory_space<vmem>>, vector<1x128xf32>
    %35 = vector.broadcast %5 : vector<8x1xf32> to vector<8x128xf32>
    %36 = vector.broadcast %34 : vector<1x128xf32> to vector<8x128xf32>
    %37 = arith.mulf %35, %36 : vector<8x128xf32>
    %38 = arith.addf %33, %37 : vector<8x128xf32>
    %c4 = arith.constant 4 : index
    %c0_7 = arith.constant 0 : index
    %39 = vector.load %arg3[%c4, %c0_7] : memref<120x128xf32, #tpu.memory_space<vmem>>, vector<1x128xf32>
    %40 = vector.broadcast %6 : vector<8x1xf32> to vector<8x128xf32>
    %41 = vector.broadcast %39 : vector<1x128xf32> to vector<8x128xf32>
    %42 = arith.mulf %40, %41 : vector<8x128xf32>
    %43 = arith.addf %38, %42 : vector<8x128xf32>
    %c5 = arith.constant 5 : index
    %c0_8 = arith.constant 0 : index
    %44 = vector.load %arg3[%c5, %c0_8] : memref<120x128xf32, #tpu.memory_space<vmem>>, vector<1x128xf32>
    %45 = vector.broadcast %7 : vector<8x1xf32> to vector<8x128xf32>
    %46 = vector.broadcast %44 : vector<1x128xf32> to vector<8x128xf32>
    %47 = arith.mulf %45, %46 : vector<8x128xf32>
    %48 = arith.addf %43, %47 : vector<8x128xf32>
    %c6 = arith.constant 6 : index
    %c0_9 = arith.constant 0 : index
    %49 = vector.load %arg3[%c6, %c0_9] : memref<120x128xf32, #tpu.memory_space<vmem>>, vector<1x128xf32>
    %50 = vector.broadcast %8 : vector<8x1xf32> to vector<8x128xf32>
    %51 = vector.broadcast %49 : vector<1x128xf32> to vector<8x128xf32>
    %52 = arith.mulf %50, %51 : vector<8x128xf32>
    %53 = arith.addf %48, %52 : vector<8x128xf32>
    %c7 = arith.constant 7 : index
    %c0_10 = arith.constant 0 : index
    %54 = vector.load %arg3[%c7, %c0_10] : memref<120x128xf32, #tpu.memory_space<vmem>>, vector<1x128xf32>
    %55 = vector.broadcast %9 : vector<8x1xf32> to vector<8x128xf32>
    %56 = vector.broadcast %54 : vector<1x128xf32> to vector<8x128xf32>
    %57 = arith.mulf %55, %56 : vector<8x128xf32>
    %58 = arith.addf %53, %57 : vector<8x128xf32>
    %c8 = arith.constant 8 : index
    %c0_11 = arith.constant 0 : index
    %59 = vector.load %arg3[%c8, %c0_11] : memref<120x128xf32, #tpu.memory_space<vmem>>, vector<1x128xf32>
    %60 = vector.broadcast %10 : vector<8x1xf32> to vector<8x128xf32>
    %61 = vector.broadcast %59 : vector<1x128xf32> to vector<8x128xf32>
    %62 = arith.mulf %60, %61 : vector<8x128xf32>
    %63 = arith.addf %58, %62 : vector<8x128xf32>
    %c9 = arith.constant 9 : index
    %c0_12 = arith.constant 0 : index
    %64 = vector.load %arg3[%c9, %c0_12] : memref<120x128xf32, #tpu.memory_space<vmem>>, vector<1x128xf32>
    %65 = vector.broadcast %11 : vector<8x1xf32> to vector<8x128xf32>
    %66 = vector.broadcast %64 : vector<1x128xf32> to vector<8x128xf32>
    %67 = arith.mulf %65, %66 : vector<8x128xf32>
    %68 = arith.addf %63, %67 : vector<8x128xf32>
    %c10 = arith.constant 10 : index
    %c0_13 = arith.constant 0 : index
    %69 = vector.load %arg3[%c10, %c0_13] : memref<120x128xf32, #tpu.memory_space<vmem>>, vector<1x128xf32>
    %70 = vector.broadcast %12 : vector<8x1xf32> to vector<8x128xf32>
    %71 = vector.broadcast %69 : vector<1x128xf32> to vector<8x128xf32>
    %72 = arith.mulf %70, %71 : vector<8x128xf32>
    %73 = arith.addf %68, %72 : vector<8x128xf32>
    %c11 = arith.constant 11 : index
    %c0_14 = arith.constant 0 : index
    %74 = vector.load %arg3[%c11, %c0_14] : memref<120x128xf32, #tpu.memory_space<vmem>>, vector<1x128xf32>
    %75 = vector.broadcast %13 : vector<8x1xf32> to vector<8x128xf32>
    %76 = vector.broadcast %74 : vector<1x128xf32> to vector<8x128xf32>
    %77 = arith.mulf %75, %76 : vector<8x128xf32>
    %78 = arith.addf %73, %77 : vector<8x128xf32>
    %c12 = arith.constant 12 : index
    %c0_15 = arith.constant 0 : index
    %79 = vector.load %arg3[%c12, %c0_15] : memref<120x128xf32, #tpu.memory_space<vmem>>, vector<1x128xf32>
    %80 = vector.broadcast %14 : vector<8x1xf32> to vector<8x128xf32>
    %81 = vector.broadcast %79 : vector<1x128xf32> to vector<8x128xf32>
    %82 = arith.mulf %80, %81 : vector<8x128xf32>
    %83 = arith.addf %78, %82 : vector<8x128xf32>
    %c13 = arith.constant 13 : index
    %c0_16 = arith.constant 0 : index
    %84 = vector.load %arg3[%c13, %c0_16] : memref<120x128xf32, #tpu.memory_space<vmem>>, vector<1x128xf32>
    %85 = vector.broadcast %15 : vector<8x1xf32> to vector<8x128xf32>
    %86 = vector.broadcast %84 : vector<1x128xf32> to vector<8x128xf32>
    %87 = arith.mulf %85, %86 : vector<8x128xf32>
    %88 = arith.addf %83, %87 : vector<8x128xf32>
    %c14 = arith.constant 14 : index
    %c0_17 = arith.constant 0 : index
    %89 = vector.load %arg3[%c14, %c0_17] : memref<120x128xf32, #tpu.memory_space<vmem>>, vector<1x128xf32>
    %90 = vector.broadcast %16 : vector<8x1xf32> to vector<8x128xf32>
    %91 = vector.broadcast %89 : vector<1x128xf32> to vector<8x128xf32>
    %92 = arith.mulf %90, %91 : vector<8x128xf32>
    %93 = arith.addf %88, %92 : vector<8x128xf32>
    %94 = math.sin %93 : vector<8x128xf32>
    %95 = vector.extract_strided_slice %94 {offsets = [0, 0], sizes = [8, 1], strides = [1, 1]} : vector<8x128xf32> to vector<8x1xf32>
    %96 = vector.extract_strided_slice %94 {offsets = [0, 1], sizes = [8, 1], strides = [1, 1]} : vector<8x128xf32> to vector<8x1xf32>
    %97 = vector.extract_strided_slice %94 {offsets = [0, 2], sizes = [8, 1], strides = [1, 1]} : vector<8x128xf32> to vector<8x1xf32>
    %98 = vector.extract_strided_slice %94 {offsets = [0, 3], sizes = [8, 1], strides = [1, 1]} : vector<8x128xf32> to vector<8x1xf32>
    %99 = vector.extract_strided_slice %94 {offsets = [0, 4], sizes = [8, 1], strides = [1, 1]} : vector<8x128xf32> to vector<8x1xf32>
    %100 = vector.extract_strided_slice %94 {offsets = [0, 5], sizes = [8, 1], strides = [1, 1]} : vector<8x128xf32> to vector<8x1xf32>
    %101 = vector.extract_strided_slice %0 {offsets = [1, 0], sizes = [1, 128], strides = [1, 1]} : vector<8x128xf32> to vector<1x128xf32>
    %c16 = arith.constant 16 : index
    %c0_18 = arith.constant 0 : index
    %102 = vector.load %arg3[%c16, %c0_18] : memref<120x128xf32, #tpu.memory_space<vmem>>, vector<1x128xf32>
    %103 = vector.broadcast %95 : vector<8x1xf32> to vector<8x128xf32>
    %104 = vector.broadcast %102 : vector<1x128xf32> to vector<8x128xf32>
    %105 = arith.mulf %103, %104 : vector<8x128xf32>
    %106 = vector.broadcast %101 : vector<1x128xf32> to vector<8x128xf32>
    %107 = arith.addf %106, %105 : vector<8x128xf32>
    %c17 = arith.constant 17 : index
    %c0_19 = arith.constant 0 : index
    %108 = vector.load %arg3[%c17, %c0_19] : memref<120x128xf32, #tpu.memory_space<vmem>>, vector<1x128xf32>
    %109 = vector.broadcast %96 : vector<8x1xf32> to vector<8x128xf32>
    %110 = vector.broadcast %108 : vector<1x128xf32> to vector<8x128xf32>
    %111 = arith.mulf %109, %110 : vector<8x128xf32>
    %112 = arith.addf %107, %111 : vector<8x128xf32>
    %c18 = arith.constant 18 : index
    %c0_20 = arith.constant 0 : index
    %113 = vector.load %arg3[%c18, %c0_20] : memref<120x128xf32, #tpu.memory_space<vmem>>, vector<1x128xf32>
    %114 = vector.broadcast %97 : vector<8x1xf32> to vector<8x128xf32>
    %115 = vector.broadcast %113 : vector<1x128xf32> to vector<8x128xf32>
    %116 = arith.mulf %114, %115 : vector<8x128xf32>
    %117 = arith.addf %112, %116 : vector<8x128xf32>
    %c19 = arith.constant 19 : index
    %c0_21 = arith.constant 0 : index
    %118 = vector.load %arg3[%c19, %c0_21] : memref<120x128xf32, #tpu.memory_space<vmem>>, vector<1x128xf32>
    %119 = vector.broadcast %98 : vector<8x1xf32> to vector<8x128xf32>
    %120 = vector.broadcast %118 : vector<1x128xf32> to vector<8x128xf32>
    %121 = arith.mulf %119, %120 : vector<8x128xf32>
    %122 = arith.addf %117, %121 : vector<8x128xf32>
    %c20 = arith.constant 20 : index
    %c0_22 = arith.constant 0 : index
    %123 = vector.load %arg3[%c20, %c0_22] : memref<120x128xf32, #tpu.memory_space<vmem>>, vector<1x128xf32>
    %124 = vector.broadcast %99 : vector<8x1xf32> to vector<8x128xf32>
    %125 = vector.broadcast %123 : vector<1x128xf32> to vector<8x128xf32>
    %126 = arith.mulf %124, %125 : vector<8x128xf32>
    %127 = arith.addf %122, %126 : vector<8x128xf32>
    %c21 = arith.constant 21 : index
    %c0_23 = arith.constant 0 : index
    %128 = vector.load %arg3[%c21, %c0_23] : memref<120x128xf32, #tpu.memory_space<vmem>>, vector<1x128xf32>
    %129 = vector.broadcast %100 : vector<8x1xf32> to vector<8x128xf32>
    %130 = vector.broadcast %128 : vector<1x128xf32> to vector<8x128xf32>
    %131 = arith.mulf %129, %130 : vector<8x128xf32>
    %132 = arith.addf %127, %131 : vector<8x128xf32>
    %133 = math.sin %132 : vector<8x128xf32>
    %134 = vector.extract_strided_slice %133 {offsets = [0, 0], sizes = [8, 1], strides = [1, 1]} : vector<8x128xf32> to vector<8x1xf32>
    %135 = vector.extract_strided_slice %133 {offsets = [0, 1], sizes = [8, 1], strides = [1, 1]} : vector<8x128xf32> to vector<8x1xf32>
    %136 = vector.extract_strided_slice %133 {offsets = [0, 2], sizes = [8, 1], strides = [1, 1]} : vector<8x128xf32> to vector<8x1xf32>
    %137 = vector.extract_strided_slice %133 {offsets = [0, 3], sizes = [8, 1], strides = [1, 1]} : vector<8x128xf32> to vector<8x1xf32>
    %138 = vector.extract_strided_slice %133 {offsets = [0, 4], sizes = [8, 1], strides = [1, 1]} : vector<8x128xf32> to vector<8x1xf32>
    %139 = vector.extract_strided_slice %133 {offsets = [0, 5], sizes = [8, 1], strides = [1, 1]} : vector<8x128xf32> to vector<8x1xf32>
    %140 = vector.extract_strided_slice %0 {offsets = [2, 0], sizes = [1, 128], strides = [1, 1]} : vector<8x128xf32> to vector<1x128xf32>
    %c32 = arith.constant 32 : index
    %c0_24 = arith.constant 0 : index
    %141 = vector.load %arg3[%c32, %c0_24] : memref<120x128xf32, #tpu.memory_space<vmem>>, vector<1x128xf32>
    %142 = vector.broadcast %134 : vector<8x1xf32> to vector<8x128xf32>
    %143 = vector.broadcast %141 : vector<1x128xf32> to vector<8x128xf32>
    %144 = arith.mulf %142, %143 : vector<8x128xf32>
    %145 = vector.broadcast %140 : vector<1x128xf32> to vector<8x128xf32>
    %146 = arith.addf %145, %144 : vector<8x128xf32>
    %c33 = arith.constant 33 : index
    %c0_25 = arith.constant 0 : index
    %147 = vector.load %arg3[%c33, %c0_25] : memref<120x128xf32, #tpu.memory_space<vmem>>, vector<1x128xf32>
    %148 = vector.broadcast %135 : vector<8x1xf32> to vector<8x128xf32>
    %149 = vector.broadcast %147 : vector<1x128xf32> to vector<8x128xf32>
    %150 = arith.mulf %148, %149 : vector<8x128xf32>
    %151 = arith.addf %146, %150 : vector<8x128xf32>
    %c34 = arith.constant 34 : index
    %c0_26 = arith.constant 0 : index
    %152 = vector.load %arg3[%c34, %c0_26] : memref<120x128xf32, #tpu.memory_space<vmem>>, vector<1x128xf32>
    %153 = vector.broadcast %136 : vector<8x1xf32> to vector<8x128xf32>
    %154 = vector.broadcast %152 : vector<1x128xf32> to vector<8x128xf32>
    %155 = arith.mulf %153, %154 : vector<8x128xf32>
    %156 = arith.addf %151, %155 : vector<8x128xf32>
    %c35 = arith.constant 35 : index
    %c0_27 = arith.constant 0 : index
    %157 = vector.load %arg3[%c35, %c0_27] : memref<120x128xf32, #tpu.memory_space<vmem>>, vector<1x128xf32>
    %158 = vector.broadcast %137 : vector<8x1xf32> to vector<8x128xf32>
    %159 = vector.broadcast %157 : vector<1x128xf32> to vector<8x128xf32>
    %160 = arith.mulf %158, %159 : vector<8x128xf32>
    %161 = arith.addf %156, %160 : vector<8x128xf32>
    %c36 = arith.constant 36 : index
    %c0_28 = arith.constant 0 : index
    %162 = vector.load %arg3[%c36, %c0_28] : memref<120x128xf32, #tpu.memory_space<vmem>>, vector<1x128xf32>
    %163 = vector.broadcast %138 : vector<8x1xf32> to vector<8x128xf32>
    %164 = vector.broadcast %162 : vector<1x128xf32> to vector<8x128xf32>
    %165 = arith.mulf %163, %164 : vector<8x128xf32>
    %166 = arith.addf %161, %165 : vector<8x128xf32>
    %c37 = arith.constant 37 : index
    %c0_29 = arith.constant 0 : index
    %167 = vector.load %arg3[%c37, %c0_29] : memref<120x128xf32, #tpu.memory_space<vmem>>, vector<1x128xf32>
    %168 = vector.broadcast %139 : vector<8x1xf32> to vector<8x128xf32>
    %169 = vector.broadcast %167 : vector<1x128xf32> to vector<8x128xf32>
    %170 = arith.mulf %168, %169 : vector<8x128xf32>
    %171 = arith.addf %166, %170 : vector<8x128xf32>
    %172 = math.sin %171 : vector<8x128xf32>
    %173 = vector.extract_strided_slice %172 {offsets = [0, 0], sizes = [8, 1], strides = [1, 1]} : vector<8x128xf32> to vector<8x1xf32>
    %174 = vector.extract_strided_slice %172 {offsets = [0, 1], sizes = [8, 1], strides = [1, 1]} : vector<8x128xf32> to vector<8x1xf32>
    %175 = vector.extract_strided_slice %172 {offsets = [0, 2], sizes = [8, 1], strides = [1, 1]} : vector<8x128xf32> to vector<8x1xf32>
    %176 = vector.extract_strided_slice %172 {offsets = [0, 3], sizes = [8, 1], strides = [1, 1]} : vector<8x128xf32> to vector<8x1xf32>
    %177 = vector.extract_strided_slice %172 {offsets = [0, 4], sizes = [8, 1], strides = [1, 1]} : vector<8x128xf32> to vector<8x1xf32>
    %178 = vector.extract_strided_slice %172 {offsets = [0, 5], sizes = [8, 1], strides = [1, 1]} : vector<8x128xf32> to vector<8x1xf32>
    %179 = vector.extract_strided_slice %0 {offsets = [3, 0], sizes = [1, 128], strides = [1, 1]} : vector<8x128xf32> to vector<1x128xf32>
    %c48 = arith.constant 48 : index
    %c0_30 = arith.constant 0 : index
    %180 = vector.load %arg3[%c48, %c0_30] : memref<120x128xf32, #tpu.memory_space<vmem>>, vector<1x128xf32>
    %181 = vector.broadcast %173 : vector<8x1xf32> to vector<8x128xf32>
    %182 = vector.broadcast %180 : vector<1x128xf32> to vector<8x128xf32>
    %183 = arith.mulf %181, %182 : vector<8x128xf32>
    %184 = vector.broadcast %179 : vector<1x128xf32> to vector<8x128xf32>
    %185 = arith.addf %184, %183 : vector<8x128xf32>
    %c49 = arith.constant 49 : index
    %c0_31 = arith.constant 0 : index
    %186 = vector.load %arg3[%c49, %c0_31] : memref<120x128xf32, #tpu.memory_space<vmem>>, vector<1x128xf32>
    %187 = vector.broadcast %174 : vector<8x1xf32> to vector<8x128xf32>
    %188 = vector.broadcast %186 : vector<1x128xf32> to vector<8x128xf32>
    %189 = arith.mulf %187, %188 : vector<8x128xf32>
    %190 = arith.addf %185, %189 : vector<8x128xf32>
    %c50 = arith.constant 50 : index
    %c0_32 = arith.constant 0 : index
    %191 = vector.load %arg3[%c50, %c0_32] : memref<120x128xf32, #tpu.memory_space<vmem>>, vector<1x128xf32>
    %192 = vector.broadcast %175 : vector<8x1xf32> to vector<8x128xf32>
    %193 = vector.broadcast %191 : vector<1x128xf32> to vector<8x128xf32>
    %194 = arith.mulf %192, %193 : vector<8x128xf32>
    %195 = arith.addf %190, %194 : vector<8x128xf32>
    %c51 = arith.constant 51 : index
    %c0_33 = arith.constant 0 : index
    %196 = vector.load %arg3[%c51, %c0_33] : memref<120x128xf32, #tpu.memory_space<vmem>>, vector<1x128xf32>
    %197 = vector.broadcast %176 : vector<8x1xf32> to vector<8x128xf32>
    %198 = vector.broadcast %196 : vector<1x128xf32> to vector<8x128xf32>
    %199 = arith.mulf %197, %198 : vector<8x128xf32>
    %200 = arith.addf %195, %199 : vector<8x128xf32>
    %c52 = arith.constant 52 : index
    %c0_34 = arith.constant 0 : index
    %201 = vector.load %arg3[%c52, %c0_34] : memref<120x128xf32, #tpu.memory_space<vmem>>, vector<1x128xf32>
    %202 = vector.broadcast %177 : vector<8x1xf32> to vector<8x128xf32>
    %203 = vector.broadcast %201 : vector<1x128xf32> to vector<8x128xf32>
    %204 = arith.mulf %202, %203 : vector<8x128xf32>
    %205 = arith.addf %200, %204 : vector<8x128xf32>
    %c53 = arith.constant 53 : index
    %c0_35 = arith.constant 0 : index
    %206 = vector.load %arg3[%c53, %c0_35] : memref<120x128xf32, #tpu.memory_space<vmem>>, vector<1x128xf32>
    %207 = vector.broadcast %178 : vector<8x1xf32> to vector<8x128xf32>
    %208 = vector.broadcast %206 : vector<1x128xf32> to vector<8x128xf32>
    %209 = arith.mulf %207, %208 : vector<8x128xf32>
    %210 = arith.addf %205, %209 : vector<8x128xf32>
    %211 = vector.extract_strided_slice %210 {offsets = [0, 16], sizes = [8, 2], strides = [1, 1]} : vector<8x128xf32> to vector<8x2xf32>
    %212 = vector.extract_strided_slice %210 {offsets = [0, 18], sizes = [8, 2], strides = [1, 1]} : vector<8x128xf32> to vector<8x2xf32>
    %cst = arith.constant 5.000000e-01 : f32
    %213 = vector.broadcast %cst : f32 to vector<8x2xf32>
    %214 = arith.mulf %213, %212 : vector<8x2xf32>
    %215 = math.exp %214 : vector<8x2xf32>
    %c0_36 = arith.constant 0 : index
    %c0_37 = arith.constant 0 : index
    %216 = vector.load %arg2[%c0_36, %c0_37] : memref<8x2xf32, #tpu.memory_space<vmem>>, vector<8x2xf32>
    %217 = arith.mulf %215, %216 : vector<8x2xf32>
    %218 = arith.addf %211, %217 : vector<8x2xf32>
    %219 = vector.extract_strided_slice %218 {offsets = [0, 0], sizes = [8, 1], strides = [1, 1]} : vector<8x2xf32> to vector<8x1xf32>
    %220 = vector.extract_strided_slice %218 {offsets = [0, 1], sizes = [8, 1], strides = [1, 1]} : vector<8x2xf32> to vector<8x1xf32>
    %221 = vector.extract_strided_slice %0 {offsets = [4, 0], sizes = [1, 128], strides = [1, 1]} : vector<8x128xf32> to vector<1x128xf32>
    %c64 = arith.constant 64 : index
    %c0_38 = arith.constant 0 : index
    %222 = vector.load %arg3[%c64, %c0_38] : memref<120x128xf32, #tpu.memory_space<vmem>>, vector<1x128xf32>
    %223 = vector.broadcast %219 : vector<8x1xf32> to vector<8x128xf32>
    %224 = vector.broadcast %222 : vector<1x128xf32> to vector<8x128xf32>
    %225 = arith.mulf %223, %224 : vector<8x128xf32>
    %226 = vector.broadcast %221 : vector<1x128xf32> to vector<8x128xf32>
    %227 = arith.addf %226, %225 : vector<8x128xf32>
    %c65 = arith.constant 65 : index
    %c0_39 = arith.constant 0 : index
    %228 = vector.load %arg3[%c65, %c0_39] : memref<120x128xf32, #tpu.memory_space<vmem>>, vector<1x128xf32>
    %229 = vector.broadcast %220 : vector<8x1xf32> to vector<8x128xf32>
    %230 = vector.broadcast %228 : vector<1x128xf32> to vector<8x128xf32>
    %231 = arith.mulf %229, %230 : vector<8x128xf32>
    %232 = arith.addf %227, %231 : vector<8x128xf32>
    %233 = math.sin %232 : vector<8x128xf32>
    %234 = vector.extract_strided_slice %233 {offsets = [0, 0], sizes = [8, 1], strides = [1, 1]} : vector<8x128xf32> to vector<8x1xf32>
    %235 = vector.extract_strided_slice %233 {offsets = [0, 1], sizes = [8, 1], strides = [1, 1]} : vector<8x128xf32> to vector<8x1xf32>
    %236 = vector.extract_strided_slice %233 {offsets = [0, 2], sizes = [8, 1], strides = [1, 1]} : vector<8x128xf32> to vector<8x1xf32>
    %237 = vector.extract_strided_slice %233 {offsets = [0, 3], sizes = [8, 1], strides = [1, 1]} : vector<8x128xf32> to vector<8x1xf32>
    %238 = vector.extract_strided_slice %233 {offsets = [0, 4], sizes = [8, 1], strides = [1, 1]} : vector<8x128xf32> to vector<8x1xf32>
    %239 = vector.extract_strided_slice %233 {offsets = [0, 5], sizes = [8, 1], strides = [1, 1]} : vector<8x128xf32> to vector<8x1xf32>
    %240 = vector.extract_strided_slice %0 {offsets = [5, 0], sizes = [1, 128], strides = [1, 1]} : vector<8x128xf32> to vector<1x128xf32>
    %c80 = arith.constant 80 : index
    %c0_40 = arith.constant 0 : index
    %241 = vector.load %arg3[%c80, %c0_40] : memref<120x128xf32, #tpu.memory_space<vmem>>, vector<1x128xf32>
    %242 = vector.broadcast %234 : vector<8x1xf32> to vector<8x128xf32>
    %243 = vector.broadcast %241 : vector<1x128xf32> to vector<8x128xf32>
    %244 = arith.mulf %242, %243 : vector<8x128xf32>
    %245 = vector.broadcast %240 : vector<1x128xf32> to vector<8x128xf32>
    %246 = arith.addf %245, %244 : vector<8x128xf32>
    %c81 = arith.constant 81 : index
    %c0_41 = arith.constant 0 : index
    %247 = vector.load %arg3[%c81, %c0_41] : memref<120x128xf32, #tpu.memory_space<vmem>>, vector<1x128xf32>
    %248 = vector.broadcast %235 : vector<8x1xf32> to vector<8x128xf32>
    %249 = vector.broadcast %247 : vector<1x128xf32> to vector<8x128xf32>
    %250 = arith.mulf %248, %249 : vector<8x128xf32>
    %251 = arith.addf %246, %250 : vector<8x128xf32>
    %c82 = arith.constant 82 : index
    %c0_42 = arith.constant 0 : index
    %252 = vector.load %arg3[%c82, %c0_42] : memref<120x128xf32, #tpu.memory_space<vmem>>, vector<1x128xf32>
    %253 = vector.broadcast %236 : vector<8x1xf32> to vector<8x128xf32>
    %254 = vector.broadcast %252 : vector<1x128xf32> to vector<8x128xf32>
    %255 = arith.mulf %253, %254 : vector<8x128xf32>
    %256 = arith.addf %251, %255 : vector<8x128xf32>
    %c83 = arith.constant 83 : index
    %c0_43 = arith.constant 0 : index
    %257 = vector.load %arg3[%c83, %c0_43] : memref<120x128xf32, #tpu.memory_space<vmem>>, vector<1x128xf32>
    %258 = vector.broadcast %237 : vector<8x1xf32> to vector<8x128xf32>
    %259 = vector.broadcast %257 : vector<1x128xf32> to vector<8x128xf32>
    %260 = arith.mulf %258, %259 : vector<8x128xf32>
    %261 = arith.addf %256, %260 : vector<8x128xf32>
    %c84 = arith.constant 84 : index
    %c0_44 = arith.constant 0 : index
    %262 = vector.load %arg3[%c84, %c0_44] : memref<120x128xf32, #tpu.memory_space<vmem>>, vector<1x128xf32>
    %263 = vector.broadcast %238 : vector<8x1xf32> to vector<8x128xf32>
    %264 = vector.broadcast %262 : vector<1x128xf32> to vector<8x128xf32>
    %265 = arith.mulf %263, %264 : vector<8x128xf32>
    %266 = arith.addf %261, %265 : vector<8x128xf32>
    %c85 = arith.constant 85 : index
    %c0_45 = arith.constant 0 : index
    %267 = vector.load %arg3[%c85, %c0_45] : memref<120x128xf32, #tpu.memory_space<vmem>>, vector<1x128xf32>
    %268 = vector.broadcast %239 : vector<8x1xf32> to vector<8x128xf32>
    %269 = vector.broadcast %267 : vector<1x128xf32> to vector<8x128xf32>
    %270 = arith.mulf %268, %269 : vector<8x128xf32>
    %271 = arith.addf %266, %270 : vector<8x128xf32>
    %272 = math.sin %271 : vector<8x128xf32>
    %273 = vector.extract_strided_slice %272 {offsets = [0, 0], sizes = [8, 1], strides = [1, 1]} : vector<8x128xf32> to vector<8x1xf32>
    %274 = vector.extract_strided_slice %272 {offsets = [0, 1], sizes = [8, 1], strides = [1, 1]} : vector<8x128xf32> to vector<8x1xf32>
    %275 = vector.extract_strided_slice %272 {offsets = [0, 2], sizes = [8, 1], strides = [1, 1]} : vector<8x128xf32> to vector<8x1xf32>
    %276 = vector.extract_strided_slice %272 {offsets = [0, 3], sizes = [8, 1], strides = [1, 1]} : vector<8x128xf32> to vector<8x1xf32>
    %277 = vector.extract_strided_slice %272 {offsets = [0, 4], sizes = [8, 1], strides = [1, 1]} : vector<8x128xf32> to vector<8x1xf32>
    %278 = vector.extract_strided_slice %272 {offsets = [0, 5], sizes = [8, 1], strides = [1, 1]} : vector<8x128xf32> to vector<8x1xf32>
    %279 = vector.extract_strided_slice %0 {offsets = [6, 0], sizes = [1, 128], strides = [1, 1]} : vector<8x128xf32> to vector<1x128xf32>
    %c96 = arith.constant 96 : index
    %c0_46 = arith.constant 0 : index
    %280 = vector.load %arg3[%c96, %c0_46] : memref<120x128xf32, #tpu.memory_space<vmem>>, vector<1x128xf32>
    %281 = vector.broadcast %273 : vector<8x1xf32> to vector<8x128xf32>
    %282 = vector.broadcast %280 : vector<1x128xf32> to vector<8x128xf32>
    %283 = arith.mulf %281, %282 : vector<8x128xf32>
    %284 = vector.broadcast %279 : vector<1x128xf32> to vector<8x128xf32>
    %285 = arith.addf %284, %283 : vector<8x128xf32>
    %c97 = arith.constant 97 : index
    %c0_47 = arith.constant 0 : index
    %286 = vector.load %arg3[%c97, %c0_47] : memref<120x128xf32, #tpu.memory_space<vmem>>, vector<1x128xf32>
    %287 = vector.broadcast %274 : vector<8x1xf32> to vector<8x128xf32>
    %288 = vector.broadcast %286 : vector<1x128xf32> to vector<8x128xf32>
    %289 = arith.mulf %287, %288 : vector<8x128xf32>
    %290 = arith.addf %285, %289 : vector<8x128xf32>
    %c98 = arith.constant 98 : index
    %c0_48 = arith.constant 0 : index
    %291 = vector.load %arg3[%c98, %c0_48] : memref<120x128xf32, #tpu.memory_space<vmem>>, vector<1x128xf32>
    %292 = vector.broadcast %275 : vector<8x1xf32> to vector<8x128xf32>
    %293 = vector.broadcast %291 : vector<1x128xf32> to vector<8x128xf32>
    %294 = arith.mulf %292, %293 : vector<8x128xf32>
    %295 = arith.addf %290, %294 : vector<8x128xf32>
    %c99 = arith.constant 99 : index
    %c0_49 = arith.constant 0 : index
    %296 = vector.load %arg3[%c99, %c0_49] : memref<120x128xf32, #tpu.memory_space<vmem>>, vector<1x128xf32>
    %297 = vector.broadcast %276 : vector<8x1xf32> to vector<8x128xf32>
    %298 = vector.broadcast %296 : vector<1x128xf32> to vector<8x128xf32>
    %299 = arith.mulf %297, %298 : vector<8x128xf32>
    %300 = arith.addf %295, %299 : vector<8x128xf32>
    %c100 = arith.constant 100 : index
    %c0_50 = arith.constant 0 : index
    %301 = vector.load %arg3[%c100, %c0_50] : memref<120x128xf32, #tpu.memory_space<vmem>>, vector<1x128xf32>
    %302 = vector.broadcast %277 : vector<8x1xf32> to vector<8x128xf32>
    %303 = vector.broadcast %301 : vector<1x128xf32> to vector<8x128xf32>
    %304 = arith.mulf %302, %303 : vector<8x128xf32>
    %305 = arith.addf %300, %304 : vector<8x128xf32>
    %c101 = arith.constant 101 : index
    %c0_51 = arith.constant 0 : index
    %306 = vector.load %arg3[%c101, %c0_51] : memref<120x128xf32, #tpu.memory_space<vmem>>, vector<1x128xf32>
    %307 = vector.broadcast %278 : vector<8x1xf32> to vector<8x128xf32>
    %308 = vector.broadcast %306 : vector<1x128xf32> to vector<8x128xf32>
    %309 = arith.mulf %307, %308 : vector<8x128xf32>
    %310 = arith.addf %305, %309 : vector<8x128xf32>
    %311 = arith.negf %310 : vector<8x128xf32>
    %312 = math.exp %311 : vector<8x128xf32>
    %cst_52 = arith.constant 1.000000e+00 : f32
    %313 = vector.broadcast %cst_52 : f32 to vector<8x128xf32>
    %314 = arith.addf %313, %312 : vector<8x128xf32>
    %315 = arith.divf %313, %314 : vector<8x128xf32>
    %316 = tpu.iota {dimensions = array<i32: 1>} : vector<8x128xi32>
    %c16_i32 = arith.constant 16 : i32
    %317 = vector.broadcast %c16_i32 : i32 to vector<8x128xi32>
    %318 = arith.cmpi sge, %316, %317 : vector<8x128xi32>
    %c20_i32 = arith.constant 20 : i32
    %319 = vector.broadcast %c20_i32 : i32 to vector<8x128xi32>
    %320 = arith.cmpi slt, %316, %319 : vector<8x128xi32>
    %321 = arith.andi %318, %320 : vector<8x128xi1>
    %322 = arith.select %321, %210, %315 : vector<8x128xi1>, vector<8x128xf32>
    %c0_53 = arith.constant 0 : index
    %c0_54 = arith.constant 0 : index
    %323 = vector.load %arg4[%c0_53, %c0_54] : memref<8x128xf32, #tpu.memory_space<vmem>>, vector<8x128xf32>
    tpu.vector_store %arg4[%c0_53, %c0_54], %322 {strides = array<i32>} : memref<8x128xf32, #tpu.memory_space<vmem>>, vector<8x128xf32>,
    return
  }
  func.func @transform_0(%arg0: i32) -> (i32, i32) {
    %c0_i32 = arith.constant 0 : i32
    %c0_i32_0 = arith.constant 0 : i32
    return %arg0, %c0_i32 : i32, i32
  }
  func.func @transform_1(%arg0: i32) -> (i32, i32) {
    %c0_i32 = arith.constant 0 : i32
    %c0_i32_0 = arith.constant 0 : i32
    return %arg0, %c0_i32 : i32, i32
  }
  func.func @transform_2(%arg0: i32) -> (i32, i32) {
    %c0_i32 = arith.constant 0 : i32
    %c0_i32_0 = arith.constant 0 : i32
    %c0_i32_1 = arith.constant 0 : i32
    return %c0_i32, %c0_i32_0 : i32, i32
  }
  func.func @transform_3(%arg0: i32) -> (i32, i32) {
    %c0_i32 = arith.constant 0 : i32
    %c0_i32_0 = arith.constant 0 : i32
    return %arg0, %c0_i32 : i32, i32
  }
}

</mosaic_0001>

<bundles_post_ra>
// kernel: vae_forward.1
= control target key start
LH: loop header
LB: loop body
LE: loop exit
PB: predicated region body
PF: predicated region fallthrough
CT: control target
= control target key end

     0   :  { %8 = vsyncpa [#allocation3], 0  ;;  %s1349_s12 = smov [#allocation2]   ;;  %s1642_s0 = inlined_call_operand.vmem [shape: f32[8,15], index: 0, kind: input, shape index: {}]   ;;  %s1643_s1 = inlined_call_operand.vmem [shape: f32[8,2], index: 1, kind: input, shape index: {}]   ;;  %s1644_s2 = inlined_call_operand.hbm [shape: f32[120,128], index: 2, kind: input, shape index: {}]   ;;  %s1645_s3 = inlined_call_operand.vmem [shape: f32[8,128], index: 3, kind: output, shape index: {}]  }
   0x1   :  { %s18_s13 = sshll.u32 %s1349_s12, 4  ;;  %s1325_s16 = scalar_lea.hbm %s1644_s2, 1920  ;;  %s19_s13 = int_to_ptr.vmem [resolvable:$true] %s18_s13 }
   0x2   :  { %p1326_p0 = scmp.ne.s32.totalorder %s1644_s2, %s1325_s16  ;;  %p1329_p1 = scmp.lt.u32.totalorder %s1325_s16, %s1644_s2 }
   0x4   :  { %p1331_p2 = pnand %p1329_p1, %p1326_p0 }
   0x6   :  { %1334 = shalt.err (!%p1331_p2)
}
   0x7   :  { %s1335_s21 = scalar_lea.vmem %s19_s13, 1920  ;;  %p1340_p4 = scmp.lt.s32.totalorder %s19_s13, %s19_s13 }
   0x8   :  { %p1336_p3 = scmp.ne.s32.totalorder %s19_s13, %s1335_s21  ;;  %p1341_p5 = scmp.lt.s32.totalorder %s1335_s21, %s1335_s21 }
   0xa   :  { %p1342_p6 = por %p1341_p5, %p1340_p4 }
   0xc   :  { %p1343_p7 = pnand %p1342_p6, %p1336_p3 }
   0xe   :  { %1346 = shalt.err (!%p1343_p7)
}
   0xf   :  { %s1350_s22 = smov 128   ;;  %s1351_s23 = smov 8  }
  0x10   :  { %24 = dma.hbm_to_vmem [thread:$0]  %s1644_s2, 1920, %s19_s13, [#allocation3], %s1350_s22, %s1350_s22, %s1351_s23  }
  0x11   :  { %1347 = dma.done.wait [#allocation3], 1920  }
  0x12   :  { %1348 = vsyncadd [#allocation3], 4294965376  ;;  %v1352_v0 = vmov 2   ;;  %v1353_v1 = vmov 0   ;;  %v29_v2 = vld [vmem:[%s1642_s0] sm:$0xff]  ;;  %v1354_v3 = vmov 3   ;;  %v41_v16 = vlaneseq }
  0x13   :  { %1252 = vset.pattern.permute.xlu1 %v1352_v0  ;;  %1250 = vset.pattern.permute.xlu0 %v1353_v1  ;;  %v1355_v4 = vmov 1   ;;  %v1356_v5 = vmov 4   ;;  %v1357_v6 = vmov 5   ;;  %v1358_v7 = vmov 6   ;;  %v1424_v19 = vld [vmem:[#allocation2 + $0x70] sm:$0xff]  ;;  %s1373_s28 = smov 18  }
  0x14   :  { %59 = vperm.xlu1 %1252, %v29_v2   ;;  %33 = vperm.xlu0 %1250, %v29_v2   ;;  %v1359_v8 = vmov 8   ;;  %v1360_v9 = vmov 7   ;;  %v1361_v10 = vmov 11   ;;  %v1362_v11 = vmov 9   ;;  %v1134_v20 = vld [vmem:[#allocation2] ss:$0 sm:$0xff] }
  0x15   :  { %v1363_v12 = vmov 14   ;;  %v1364_v13 = vmov 10   ;;  %v1365_v14 = vmov 12   ;;  %v1366_v15 = vmov 13   ;;  %v1135_v25 = vld [vmem:[#allocation2 + $0x1] ss:$0 sm:$0xff] }
  0x16   :  { %v1421_v17 = vshrl.u32 %v41_v16, 7  ;;  %v1136_v27 = vld [vmem:[#allocation2 + $0x2] ss:$0 sm:$0xff]  ;;  %v1137_v31 = vld [vmem:[#allocation2 + $0x3] ss:$0 sm:$0xff] }
  0x17   :  { %v1138_v34 = vld [vmem:[#allocation2 + $0x4] ss:$0 sm:$0xff]  ;;  %v1139_v38 = vld [vmem:[#allocation2 + $0x5] ss:$0 sm:$0xff]  ;;  %v1140_v44 = vld [vmem:[#allocation2 + $0x6] ss:$0 sm:$0xff] }
  0x18   :  { %1253 = vset.pattern.permute.xlu1 %v1354_v3  ;;  %1251 = vset.pattern.permute.xlu0 %v1355_v4  ;;  %v43_v18 = vsub.s32 0, %v1421_v17  ;;  %v1141_v48 = vld [vmem:[#allocation2 + $0x7] ss:$0 sm:$0xff]  ;;  %v1142_v50 = vld [vmem:[#allocation2 + $0x8] ss:$0 sm:$0xff] }
  0x19   :  { %70 = vperm.xlu1 %1253, %v29_v2   ;;  %48 = vperm.xlu0 %1251, %v29_v2   ;;  %v1143_v56 = vld [vmem:[#allocation2 + $0x9] ss:$0 sm:$0xff]  ;;  %v1144_v60 = vld [vmem:[#allocation2 + $0xa] ss:$0 sm:$0xff]  ;;  %v1145_v62 = vld [vmem:[#allocation2 + $0xb] ss:$0 sm:$0xff] }
  0x1a   :  { %v44_v23 = vrot.slane %v1424_v19, %v43_v18 }
  0x1d   :  { %1254 = vset.pattern.permute.xlu1 %v1356_v5  ;;  %1255 = vset.pattern.permute.xlu0 %v1357_v6 }
  0x1e   :  { %81 = vperm.xlu1 %1254, %v29_v2   ;;  %92 = vperm.xlu0 %1255, %v29_v2  }
  0x22   :  { %1256 = vset.pattern.permute.xlu1 %v1358_v7  ;;  %1258 = vset.pattern.permute.xlu0 %v1359_v8 }
  0x23   :  { %103 = vperm.xlu1 %1256, %v29_v2   ;;  %125 = vperm.xlu0 %1258, %v29_v2  }
  0x27   :  { %1257 = vset.pattern.permute.xlu1 %v1360_v9  ;;  %1261 = vset.pattern.permute.xlu0 %v1361_v10  ;;  %v1146_v10 = vld [vmem:[#allocation2 + $0xc] ss:$0 sm:$0xff] }
  0x28   :  { %114 = vperm.xlu1 %1257, %v29_v2   ;;  %158 = vperm.xlu0 %1261, %v29_v2  }
  0x2c   :  { %1259 = vset.pattern.permute.xlu1 %v1362_v11  ;;  %1264 = vset.pattern.permute.xlu0 %v1363_v12 }
  0x2d   :  { %136 = vperm.xlu1 %1259, %v29_v2   ;;  %191 = vperm.xlu0 %1264, %v29_v2  }
  0x31   :  { %1260 = vset.pattern.permute.xlu1 %v1364_v13  ;;  %1267 = vset.pattern.permute.xlu0 %v1352_v0 }
  0x32   :  { %147 = vperm.xlu1 %1260, %v29_v2  }
  0x36   :  { %1262 = vset.pattern.permute.xlu1 %v1365_v14  ;;  %v1147_v14 = vld [vmem:[#allocation2 + $0xd] ss:$0 sm:$0xff] }
  0x37   :  { %169 = vperm.xlu1 %1262, %v29_v2  }
  0x3b   :  { %1263 = vset.pattern.permute.xlu1 %v1366_v15  ;;  %v1148_v15 = vld [vmem:[#allocation2 + $0xe] ss:$0 sm:$0xff] }
  0x3c   :  { %180 = vperm.xlu1 %1263, %v29_v2  }
  0x40   :  { %1265 = vset.pattern.permute.xlu1 %v1353_v1 }
  0x93   :  { %v60_v21 = vpop.permute.xlu1 %59  ;;  %v34_v22 = vpop.permute.xlu0 %33 }
  0x94   :  { %v40_v24 = vmul.f32 %v1134_v20, %v34_v22  ;;  %v66_v32 = vmul.f32 %v1136_v27, %v60_v21 }
  0x96   :  { %v45_v26 = vadd.f32 %v44_v23, %v40_v24 }
  0x98   :  { %v71_v28 = vpop.permute.xlu1 %70  ;;  %v49_v29 = vpop.permute.xlu0 %48 }
  0x99   :  { %v55_v30 = vmul.f32 %v1135_v25, %v49_v29  ;;  %v77_v35 = vmul.f32 %v1137_v31, %v71_v28 }
  0x9b   :  { %v56_v33 = vadd.f32 %v55_v30, %v45_v26 }
  0x9d   :  { %v67_v36 = vadd.f32 %v66_v32, %v56_v33  ;;  %v82_v37 = vpop.permute.xlu1 %81  ;;  %v93_v39 = vpop.permute.xlu0 %92 }
  0x9e   :  { %v88_v40 = vmul.f32 %v1138_v34, %v82_v37  ;;  %v99_v42 = vmul.f32 %v1139_v38, %v93_v39  ;;  %v1368_v38 = vmov 2475754826  }
  0x9f   :  { %v78_v41 = vadd.f32 %v77_v35, %v67_v36  ;;  %v1367_v36 = vmov 683565275  }
  0xa1   :  { %v89_v43 = vadd.f32 %v88_v40, %v78_v41  ;;  %v1369_v41 = vmov 2131351028  }
  0xa2   :  { %v104_v45 = vpop.permute.xlu1 %103  ;;  %v126_v51 = vpop.permute.xlu0 %125 }
  0xa3   :  { %v100_v46 = vadd.f32 %v99_v42, %v89_v43  ;;  %v110_v47 = vmul.f32 %v1140_v44, %v104_v45  ;;  %v132_v55 = vmul.f32 %v1142_v50, %v126_v51  ;;  %v1370_v44 = vmov 2102212464  }
  0xa4   :  { %v1372_v50 = vmov 1326507024  }
  0xa5   :  { %v111_v52 = vadd.f32 %v110_v47, %v100_v46  ;;  %v1371_v47 = vmov 920167782  }
  0xa7   :  { %v115_v49 = vpop.permute.xlu1 %114  ;;  %v159_v63 = vpop.permute.xlu0 %158 }
  0xa8   :  { %v121_v53 = vmul.f32 %v1141_v48, %v115_v49  ;;  %v165_v9 = vmul.f32 %v1145_v62, %v159_v63 }
  0xaa   :  { %v122_v54 = vadd.f32 %v121_v53, %v111_v52 }
  0xac   :  { %v137_v57 = vpop.permute.xlu1 %136  ;;  %v133_v58 = vadd.f32 %v132_v55, %v122_v54  ;;  %v192_v18 = vpop.permute.xlu0 %191 }
  0xad   :  { %v143_v59 = vmul.f32 %v1143_v56, %v137_v57  ;;  %v198_v23 = vmul.f32 %v1148_v15, %v192_v18 }
  0xaf   :  { %v144_v2 = vadd.f32 %v143_v59, %v133_v58 }
  0xb1   :  { %v148_v61 = vpop.permute.xlu1 %147 }
  0xb2   :  { %v154_v7 = vmul.f32 %v1144_v60, %v148_v61 }
  0xb4   :  { %v155_v8 = vadd.f32 %v154_v7, %v144_v2 }
  0xb6   :  { %v170_v11 = vpop.permute.xlu1 %169  ;;  %v166_v12 = vadd.f32 %v165_v9, %v155_v8 }
  0xb7   :  { %v176_v13 = vmul.f32 %v1146_v10, %v170_v11 }
  0xb9   :  { %v177_v21 = vadd.f32 %v176_v13, %v166_v12 }
  0xbb   :  { %v181_v20 = vpop.permute.xlu1 %180 }
  0xbc   :  { %v187_v22 = vmul.f32 %v1147_v14, %v181_v20 }
  0xbe   :  { %v188_v24 = vadd.f32 %v187_v22, %v177_v21 }
  0xc0   :  { %v1427_v25 = vadd.f32 %v198_v23, %v188_v24 }
  0xc2   :  { %v203_v26 = vand.u32 2139095040, %v1427_v25  ;;  %v200_v30 = vand.u32 2147483647, %v1427_v25  ;;  %vm202_vm7 = vcmp.lt.s32.totalorder %v1427_v25, 0  ;;  %vm292_vm12 = vweird.f32 %v1427_v25 }
  0xc4   :  { %v204_v27 = vshrl.u32 %v203_v26, 23  ;;  %v207_v33 = vand.u32 8388607, %v200_v30  ;;  %vm201_vm8 = vcmp.le.f32.partialorder %v200_v30, 0.7853982 }
  0xc6   :  { %v1149_v28 = vadd.s32 4294967169, %v204_v27  ;;  %v208_v52 = vor.u32 8388608, %v207_v33 }
  0xc8   :  { %v210_v29 = vadd.s32 1, %v1149_v28  ;;  %v248_v8 = vshll.u32 %v208_v52, 8 }
  0xca   :  { %vm211_vm0 = vcmp.gt.s32.totalorder %v210_v29, 0 }
  0xcb   :  { %v212_v31 = vsel %vm211_vm0, %v210_v29, 0 }
  0xcc   :  { %v214_v32 = vand.u32 31, %v212_v31  ;;  %v213_v35 = vshrl.u32 %v212_v31, 5 }
  0xce   :  { %v215_v34 = vsub.s32 32, %v214_v32  ;;  %v217_v37 = vshll.u32 %v1367_v36, %v214_v32  ;;  %v220_v39 = vshll.u32 %v1368_v38, %v214_v32  ;;  %v223_v43 = vshll.u32 %v1369_v41, %v214_v32 }
  0xcf   :  { %v226_v46 = vshll.u32 %v1370_v44, %v214_v32  ;;  %v229_v49 = vshll.u32 %v1371_v47, %v214_v32  ;;  %vm232_vm1 = vcmp.lt.s32.totalorder %v213_v35, 1  ;;  %vm235_vm2 = vcmp.lt.s32.totalorder %v213_v35, 4 }
  0xd0   :  { %v218_v40 = vshrl.u32 %v1368_v38, %v215_v34  ;;  %v221_v42 = vshrl.u32 %v1369_v41, %v215_v34  ;;  %v224_v45 = vshrl.u32 %v1370_v44, %v215_v34  ;;  %v227_v48 = vshrl.u32 %v1371_v47, %v215_v34 }
  0xd1   :  { %v230_v51 = vshrl.u32 %v1372_v50, %v215_v34  ;;  %v216_v61 = vshrl.u32 %v1367_v36, %v215_v34  ;;  %vm234_vm3 = vcmp.lt.s32.totalorder %v213_v35, 3  ;;  %vm233_vm4 = vcmp.lt.s32.totalorder %v213_v35, 2 }
  0xd2   :  { %v219_v53 = vor.u32 %v218_v40, %v217_v37  ;;  %v222_v54 = vor.u32 %v221_v42, %v220_v39  ;;  %v225_v55 = vor.u32 %v224_v45, %v223_v43  ;;  %v228_v56 = vor.u32 %v227_v48, %v226_v46 }
  0xd3   :  { %v231_v57 = vor.u32 %v230_v51, %v229_v49 }
  0xd4   :  { %v237_v58 = vsel %vm235_vm2, %v225_v55, 2102212464  ;;  %v240_v59 = vsel %vm232_vm1, %v219_v53, %v222_v54  ;;  %v244_v60 = vsel %vm232_vm1, %v222_v54, %v225_v55  ;;  %v241_v62 = vsel %vm235_vm2, %v228_v56, 920167782 }
  0xd5   :  { %v245_v63 = vsel %vm235_vm2, %v231_v57, 1326507024  ;;  %v242_v2 = vsel %vm234_vm3, %v225_v55, %v241_v62  ;;  %v236_v9 = vsel %vm232_vm1, %v216_v61, %v219_v53  ;;  %v238_v10 = vsel %vm234_vm3, %v222_v54, %v237_v58 }
  0xd6   :  { %v246_v7 = vsel %vm234_vm3, %v228_v56, %v245_v63  ;;  %v243_v11 = vsel %vm233_vm4, %v240_v59, %v242_v2  ;;  %v239_v20 = vsel %vm233_vm4, %v236_v9, %v238_v10 }
  0xd7   :  { %v247_v12 = vsel %vm233_vm4, %v244_v60, %v246_v7  ;;  %v1447_v15 = vmul.u32.u64.low %v248_v8, %v243_v11  ;;  %v1448_v18 = vmul.u32.u64.high %v248_v8, %v243_v11, %v1447_v15  ;;  %v255_v22 = vmul.u32 %v248_v8, %v239_v20  ;;  %v1153_v11 = vld [vmem:[#allocation2 + $0x10] ss:$0 sm:$0xff] }
  0xd8   :  { %v1444_v13 = vmul.u32.u64.low %v248_v8, %v247_v12  ;;  %v1445_v14 = vmul.u32.u64.high %v248_v8, %v247_v12, %v1444_v13 }
  0xd9   :  { %v258_v21 = vadd.s32 1, %v1448_v18 }
  0xda   :  { %vm257_vm5 = vc.u32 %v1445_v14, %v1447_v15  ;;  %v256_v37 = vadd.s32 %v1447_v15, %v1445_v14  ;;  %v1154_v15 = vld [vmem:[#allocation2 + $0x11] ss:$0 sm:$0xff] }
  0xdb   :  { %v259_v23 = vsel %vm257_vm5, %v258_v21, %v1448_v18 }
  0xdc   :  { %v260_v24 = vadd.s32 %v259_v23, %v255_v22  ;;  %v1155_v22 = vld [vmem:[#allocation2 + $0x12] ss:$0 sm:$0xff] }
  0xde   :  { %v261_v26 = vadd.s32 536870912, %v260_v24 }
  0xe0   :  { %v262_v27 = vshrl.u32 %v261_v26, 30  ;;  %v1156_v26 = vld [vmem:[#allocation2 + $0x13] ss:$0 sm:$0xff] }
  0xe2   :  { %v263_v28 = vshll.u32 %v262_v27, 30  ;;  %v286_v54 = vsub.s32 4, %v262_v27 }
  0xe4   :  { %v264_v29 = vsub.s32 %v260_v24, %v263_v28  ;;  %v287_v57 = vsel %vm202_vm7, %v286_v54, %v262_v27 }
  0xe5   :  { %v289_v59 = vsel %vm201_vm8, 0, %v287_v57 }
  0xe6   :  { %v266_v31 = vsub.s32 0, %v264_v29  ;;  %v293_v60 = vadd.s32 3, %v289_v59 }
  0xe8   :  { %v1150_v32 = vmin.u32 %v266_v31, %v264_v29  ;;  %v294_v61 = vand.u32 3, %v293_v60 }
  0xea   :  { %v268_v33 = vclz %v1150_v32  ;;  %vm299_vm9 = vcmp.eq.s32.totalorder %v294_v61, 2  ;;  %vm296_vm10 = vcmp.eq.s32.totalorder %v294_v61, 0  ;;  %vm295_vm11 = vcmp.lt.s32.totalorder %v294_v61, 2  ;;  %v1157_v32 = vld [vmem:[#allocation2 + $0x14] ss:$0 sm:$0xff] }
  0xec   :  { %v1151_v34 = vadd.s32 4294967294, %v268_v33  ;;  %v1158_v33 = vld [vmem:[#allocation2 + $0x15] ss:$0 sm:$0xff] }
  0xee   :  { %vm1152_vm6 = vcmp.lt.s32.totalorder %v1151_v34, 0 }
  0xef   :  { %v271_v35 = vsel %vm1152_vm6, 0, %v1151_v34 }
  0xf0   :  { %v272_v39 = vsub.s32 32, %v271_v35  ;;  %v276_v40 = vsub.s32 4294967266, %v271_v35  ;;  %v273_v42 = vshll.u32 %v264_v29, %v271_v35 }
  0xf2   :  { %v274_v43 = vshrl.u32 %v256_v37, %v272_v39  ;;  %v277_v45 = vadd.s32 127, %v276_v40 }
  0xf4   :  { %v275_v46 = vor.u32 %v274_v43, %v273_v42  ;;  %v278_v48 = vshll.u32 %v277_v45, 23 }
  0xf6   :  { %v279_v49 = vor.u32 4788187, %v278_v48  ;;  %v282_v52 = vcvt.s32.f32 %v275_v46 }
  0xf8   :  { %v280_v51 = vand.u32 2147483647, %v279_v49 }
  0xfa   :  { %v283_v53 = vmul.f32 %v282_v52, %v280_v51 }
  0xfc   :  { %v284_v55 = vxor.u32 2147483648, %v283_v53 }
  0xfe   :  { %v285_v56 = vsel %vm202_vm7, %v284_v55, %v283_v53 }
  0xff   :  { %v288_v58 = vsel %vm201_vm8, %v1427_v25, %v285_v56  ;;  %v317_v25 = vsub.s32 1, %v1421_v17 }
 0x100   :  { %1298 = vcosq.f32 %v288_v58 }
 0x101   :  { %1300 = vsinq.f32 %v288_v58  ;;  %v318_v13 = vrot.slane %v1424_v19, %v317_v25 }
 0x10a   :  { %v1299_v62 = vpop.eup %1298 }
 0x10b   :  { %v1301_v63 = vpop.eup %1300  ;;  %v300_v2 = vxor.u32 2147483648, %v1299_v62 }
 0x10c   :  { %v297_v7 = vxor.u32 2147483648, %v1301_v63 }
 0x10d   :  { %v301_v8 = vsel %vm299_vm9, %v300_v2, %v1301_v63 }
 0x10e   :  { %v298_v9 = vsel %vm296_vm10, %v1299_v62, %v297_v7 }
 0x10f   :  { %v302_v30 = vsel %vm295_vm11, %v298_v9, %v301_v8 }
 0x110   :  { %v303_v10 = vsel %vm292_vm12, nan, %v302_v30 }
 0x111   :  { %333 = vperm.xlu0 %1267, %v303_v10   ;;  %307 = vperm.xlu1 %1265, %v303_v10  }
 0x115   :  { %1270 = vset.pattern.permute.xlu0 %v1357_v6  ;;  %1266 = vset.pattern.permute.xlu1 %v1355_v4 }
 0x116   :  { %366 = vperm.xlu0 %1270, %v303_v10   ;;  %322 = vperm.xlu1 %1266, %v303_v10  }
 0x11a   :  { %1268 = vset.pattern.permute.xlu1 %v1354_v3  ;;  %1273 = vset.pattern.permute.xlu0 %v1352_v0 }
 0x11b   :  { %344 = vperm.xlu1 %1268, %v303_v10  }
 0x11f   :  { %1269 = vset.pattern.permute.xlu1 %v1356_v5 }
 0x120   :  { %355 = vperm.xlu1 %1269, %v303_v10  }
 0x124   :  { %1271 = vset.pattern.permute.xlu1 %v1353_v1 }
 0x190   :  { %v308_v12 = vpop.permute.xlu1 %307  ;;  %v334_v23 = vpop.permute.xlu0 %333 }
 0x191   :  { %v314_v14 = vmul.f32 %v1153_v11, %v308_v12  ;;  %v340_v27 = vmul.f32 %v1155_v22, %v334_v23 }
 0x193   :  { %v319_v20 = vadd.f32 %v318_v13, %v314_v14 }
 0x195   :  { %v323_v18 = vpop.permute.xlu1 %322  ;;  %v367_v34 = vpop.permute.xlu0 %366 }
 0x196   :  { %v329_v21 = vmul.f32 %v1154_v15, %v323_v18  ;;  %v373_v40 = vmul.f32 %v1158_v33, %v367_v34 }
 0x198   :  { %v330_v24 = vadd.f32 %v329_v21, %v319_v20 }
 0x19a   :  { %v345_v28 = vpop.permute.xlu1 %344  ;;  %v341_v29 = vadd.f32 %v340_v27, %v330_v24 }
 0x19b   :  { %v351_v31 = vmul.f32 %v1156_v26, %v345_v28 }
 0x19d   :  { %v352_v37 = vadd.f32 %v351_v31, %v341_v29 }
 0x19f   :  { %v356_v35 = vpop.permute.xlu1 %355 }
 0x1a0   :  { %v362_v39 = vmul.f32 %v1157_v32, %v356_v35 }
 0x1a2   :  { %v363_v42 = vadd.f32 %v362_v39, %v352_v37 }
 0x1a4   :  { %v1467_v43 = vadd.f32 %v373_v40, %v363_v42 }
 0x1a6   :  { %v378_v45 = vand.u32 2139095040, %v1467_v43  ;;  %v375_v51 = vand.u32 2147483647, %v1467_v43  ;;  %vm377_vm4 = vcmp.lt.s32.totalorder %v1467_v43, 0  ;;  %vm467_vm9 = vweird.f32 %v1467_v43 }
 0x1a8   :  { %v379_v46 = vshrl.u32 %v378_v45, 23  ;;  %v382_v54 = vand.u32 8388607, %v375_v51  ;;  %vm376_vm5 = vcmp.le.f32.partialorder %v375_v51, 0.7853982 }
 0x1aa   :  { %v1159_v48 = vadd.s32 4294967169, %v379_v46  ;;  %v383_v9 = vor.u32 8388608, %v382_v54 }
 0x1ac   :  { %v385_v49 = vadd.s32 1, %v1159_v48  ;;  %v423_v24 = vshll.u32 %v383_v9, 8 }
 0x1ae   :  { %vm386_vm13 = vcmp.gt.s32.totalorder %v385_v49, 0 }
 0x1af   :  { %v387_v52 = vsel %vm386_vm13, %v385_v49, 0 }
 0x1b0   :  { %v389_v53 = vand.u32 31, %v387_v52  ;;  %v388_v56 = vshrl.u32 %v387_v52, 5 }
 0x1b2   :  { %v390_v55 = vsub.s32 32, %v389_v53  ;;  %v392_v57 = vshll.u32 %v1367_v36, %v389_v53  ;;  %v395_v58 = vshll.u32 %v1368_v38, %v389_v53  ;;  %v398_v61 = vshll.u32 %v1369_v41, %v389_v53 }
 0x1b3   :  { %v401_v63 = vshll.u32 %v1370_v44, %v389_v53  ;;  %v404_v7 = vshll.u32 %v1371_v47, %v389_v53  ;;  %vm407_vm14 = vcmp.lt.s32.totalorder %v388_v56, 1  ;;  %vm410_vm15 = vcmp.lt.s32.totalorder %v388_v56, 4 }
 0x1b4   :  { %v393_v59 = vshrl.u32 %v1368_v38, %v390_v55  ;;  %v396_v60 = vshrl.u32 %v1369_v41, %v390_v55  ;;  %v399_v62 = vshrl.u32 %v1370_v44, %v390_v55  ;;  %v402_v2 = vshrl.u32 %v1371_v47, %v390_v55 }
 0x1b5   :  { %v405_v8 = vshrl.u32 %v1372_v50, %v390_v55  ;;  %v391_v18 = vshrl.u32 %v1367_v36, %v390_v55  ;;  %vm409_vm0 = vcmp.lt.s32.totalorder %v388_v56, 3  ;;  %vm408_vm1 = vcmp.lt.s32.totalorder %v388_v56, 2 }
 0x1b6   :  { %v394_v30 = vor.u32 %v393_v59, %v392_v57  ;;  %v397_v10 = vor.u32 %v396_v60, %v395_v58  ;;  %v400_v25 = vor.u32 %v399_v62, %v398_v61  ;;  %v403_v11 = vor.u32 %v402_v2, %v401_v63 }
 0x1b7   :  { %v406_v12 = vor.u32 %v405_v8, %v404_v7 }
 0x1b8   :  { %v412_v13 = vsel %vm410_vm15, %v400_v25, 2102212464  ;;  %v415_v14 = vsel %vm407_vm14, %v394_v30, %v397_v10  ;;  %v419_v15 = vsel %vm407_vm14, %v397_v10, %v400_v25  ;;  %v416_v20 = vsel %vm410_vm15, %v403_v11, 920167782 }
 0x1b9   :  { %v420_v21 = vsel %vm410_vm15, %v406_v12, 1326507024  ;;  %v417_v22 = vsel %vm409_vm0, %v400_v25, %v416_v20  ;;  %v411_v26 = vsel %vm407_vm14, %v391_v18, %v394_v30  ;;  %v413_v27 = vsel %vm409_vm0, %v397_v10, %v412_v13 }
 0x1ba   :  { %v421_v23 = vsel %vm409_vm0, %v403_v11, %v420_v21  ;;  %v418_v28 = vsel %vm408_vm1, %v415_v14, %v417_v22  ;;  %v414_v35 = vsel %vm408_vm1, %v411_v26, %v413_v27 }
 0x1bb   :  { %v422_v29 = vsel %vm408_vm1, %v419_v15, %v421_v23  ;;  %v1487_v33 = vmul.u32.u64.low %v423_v24, %v418_v28  ;;  %v1488_v34 = vmul.u32.u64.high %v423_v24, %v418_v28, %v1487_v33  ;;  %v430_v39 = vmul.u32 %v423_v24, %v414_v35  ;;  %v1163_v28 = vld [vmem:[#allocation2 + $0x20] ss:$0 sm:$0xff] }
 0x1bc   :  { %v1484_v31 = vmul.u32.u64.low %v423_v24, %v422_v29  ;;  %v1485_v32 = vmul.u32.u64.high %v423_v24, %v422_v29, %v1484_v31 }
 0x1bd   :  { %v433_v37 = vadd.s32 1, %v1488_v34 }
 0x1be   :  { %vm432_vm2 = vc.u32 %v1485_v32, %v1487_v33  ;;  %v431_v57 = vadd.s32 %v1487_v33, %v1485_v32  ;;  %v1164_v33 = vld [vmem:[#allocation2 + $0x21] ss:$0 sm:$0xff] }
 0x1bf   :  { %v434_v40 = vsel %vm432_vm2, %v433_v37, %v1488_v34 }
 0x1c0   :  { %v435_v42 = vadd.s32 %v434_v40, %v430_v39  ;;  %v1165_v39 = vld [vmem:[#allocation2 + $0x22] ss:$0 sm:$0xff] }
 0x1c2   :  { %v436_v45 = vadd.s32 536870912, %v435_v42 }
 0x1c4   :  { %v437_v46 = vshrl.u32 %v436_v45, 30  ;;  %v1166_v45 = vld [vmem:[#allocation2 + $0x23] ss:$0 sm:$0xff] }
 0x1c6   :  { %v438_v48 = vshll.u32 %v437_v46, 30  ;;  %v461_v10 = vsub.s32 4, %v437_v46 }
 0x1c8   :  { %v439_v49 = vsub.s32 %v435_v42, %v438_v48  ;;  %v462_v12 = vsel %vm377_vm4, %v461_v10, %v437_v46 }
 0x1c9   :  { %v464_v14 = vsel %vm376_vm5, 0, %v462_v12 }
 0x1ca   :  { %v441_v52 = vsub.s32 0, %v439_v49  ;;  %v468_v15 = vadd.s32 3, %v464_v14 }
 0x1cc   :  { %v1160_v53 = vmin.u32 %v441_v52, %v439_v49  ;;  %v469_v18 = vand.u32 3, %v468_v15 }
 0x1ce   :  { %v443_v54 = vclz %v1160_v53  ;;  %vm474_vm6 = vcmp.eq.s32.totalorder %v469_v18, 2  ;;  %vm471_vm7 = vcmp.eq.s32.totalorder %v469_v18, 0  ;;  %vm470_vm8 = vcmp.lt.s32.totalorder %v469_v18, 2  ;;  %v1167_v53 = vld [vmem:[#allocation2 + $0x24] ss:$0 sm:$0xff] }
 0x1d0   :  { %v1161_v55 = vadd.s32 4294967294, %v443_v54  ;;  %v1168_v54 = vld [vmem:[#allocation2 + $0x25] ss:$0 sm:$0xff] }
 0x1d2   :  { %vm1162_vm3 = vcmp.lt.s32.totalorder %v1161_v55, 0 }
 0x1d3   :  { %v446_v56 = vsel %vm1162_vm3, 0, %v1161_v55 }
 0x1d4   :  { %v447_v58 = vsub.s32 32, %v446_v56  ;;  %v451_v59 = vsub.s32 4294967266, %v446_v56  ;;  %v448_v60 = vshll.u32 %v439_v49, %v446_v56 }
 0x1d6   :  { %v449_v61 = vshrl.u32 %v431_v57, %v447_v58  ;;  %v452_v62 = vadd.s32 127, %v451_v59 }
 0x1d8   :  { %v450_v63 = vor.u32 %v449_v61, %v448_v60  ;;  %v453_v2 = vshll.u32 %v452_v62, 23 }
 0x1da   :  { %v454_v7 = vor.u32 4788187, %v453_v2  ;;  %v457_v9 = vcvt.s32.f32 %v450_v63 }
 0x1dc   :  { %v455_v8 = vand.u32 2147483647, %v454_v7 }
 0x1de   :  { %v458_v30 = vmul.f32 %v457_v9, %v455_v8 }
 0x1e0   :  { %v459_v25 = vxor.u32 2147483648, %v458_v30 }
 0x1e2   :  { %v460_v11 = vsel %vm377_vm4, %v459_v25, %v458_v30 }
 0x1e3   :  { %v463_v13 = vsel %vm376_vm5, %v1467_v43, %v460_v11  ;;  %v492_v43 = vsub.s32 2, %v1421_v17 }
 0x1e4   :  { %1302 = vcosq.f32 %v463_v13 }
 0x1e5   :  { %1304 = vsinq.f32 %v463_v13  ;;  %v493_v31 = vrot.slane %v1424_v19, %v492_v43 }
 0x1ee   :  { %v1303_v20 = vpop.eup %1302 }
 0x1ef   :  { %v1305_v21 = vpop.eup %1304  ;;  %v475_v22 = vxor.u32 2147483648, %v1303_v20 }
 0x1f0   :  { %v472_v23 = vxor.u32 2147483648, %v1305_v21 }
 0x1f1   :  { %v476_v24 = vsel %vm474_vm6, %v475_v22, %v1305_v21 }
 0x1f2   :  { %v473_v26 = vsel %vm471_vm7, %v1303_v20, %v472_v23 }
 0x1f3   :  { %v477_v51 = vsel %vm470_vm8, %v473_v26, %v476_v24 }
 0x1f4   :  { %v478_v27 = vsel %vm467_vm9, nan, %v477_v51 }
 0x1f5   :  { %508 = vperm.xlu0 %1273, %v478_v27   ;;  %482 = vperm.xlu1 %1271, %v478_v27  }
 0x1f9   :  { %1276 = vset.pattern.permute.xlu0 %v1357_v6  ;;  %1272 = vset.pattern.permute.xlu1 %v1355_v4 }
 0x1fa   :  { %541 = vperm.xlu0 %1276, %v478_v27   ;;  %497 = vperm.xlu1 %1272, %v478_v27  }
 0x1fe   :  { %1274 = vset.pattern.permute.xlu1 %v1354_v3  ;;  %1279 = vset.pattern.permute.xlu0 %v1352_v0 }
 0x1ff   :  { %519 = vperm.xlu1 %1274, %v478_v27  }
 0x203   :  { %1275 = vset.pattern.permute.xlu1 %v1356_v5 }
 0x204   :  { %530 = vperm.xlu1 %1275, %v478_v27  }
 0x208   :  { %1277 = vset.pattern.permute.xlu1 %v1353_v1 }
 0x274   :  { %v483_v29 = vpop.permute.xlu1 %482  ;;  %v509_v40 = vpop.permute.xlu0 %508 }
 0x275   :  { %v489_v32 = vmul.f32 %v1163_v28, %v483_v29  ;;  %v515_v46 = vmul.f32 %v1165_v39, %v509_v40 }
 0x277   :  { %v494_v35 = vadd.f32 %v493_v31, %v489_v32 }
 0x279   :  { %v498_v34 = vpop.permute.xlu1 %497  ;;  %v542_v55 = vpop.permute.xlu0 %541 }
 0x27a   :  { %v504_v37 = vmul.f32 %v1164_v33, %v498_v34  ;;  %v548_v59 = vmul.f32 %v1168_v54, %v542_v55 }
 0x27c   :  { %v505_v42 = vadd.f32 %v504_v37, %v494_v35 }
 0x27e   :  { %v520_v48 = vpop.permute.xlu1 %519  ;;  %v516_v49 = vadd.f32 %v515_v46, %v505_v42 }
 0x27f   :  { %v526_v52 = vmul.f32 %v1166_v45, %v520_v48 }
 0x281   :  { %v527_v57 = vadd.f32 %v526_v52, %v516_v49 }
 0x283   :  { %v531_v56 = vpop.permute.xlu1 %530 }
 0x284   :  { %v537_v58 = vmul.f32 %v1167_v53, %v531_v56 }
 0x286   :  { %v538_v60 = vadd.f32 %v537_v58, %v527_v57 }
 0x288   :  { %v1507_v61 = vadd.f32 %v548_v59, %v538_v60 }
 0x28a   :  { %v553_v62 = vand.u32 2139095040, %v1507_v61  ;;  %v550_v8 = vand.u32 2147483647, %v1507_v61  ;;  %vm552_vm1 = vcmp.lt.s32.totalorder %v1507_v61, 0  ;;  %vm642_vm6 = vweird.f32 %v1507_v61 }
 0x28c   :  { %v554_v63 = vshrl.u32 %v553_v62, 23  ;;  %v557_v10 = vand.u32 8388607, %v550_v8  ;;  %vm551_vm2 = vcmp.le.f32.partialorder %v550_v8, 0.7853982 }
 0x28e   :  { %v1169_v2 = vadd.s32 4294967169, %v554_v63  ;;  %v558_v26 = vor.u32 8388608, %v557_v10 }
 0x290   :  { %v560_v7 = vadd.s32 1, %v1169_v2  ;;  %v598_v42 = vshll.u32 %v558_v26, 8 }
 0x292   :  { %vm561_vm10 = vcmp.gt.s32.totalorder %v560_v7, 0 }
 0x293   :  { %v562_v9 = vsel %vm561_vm10, %v560_v7, 0 }
 0x294   :  { %v564_v30 = vand.u32 31, %v562_v9  ;;  %v563_v11 = vshrl.u32 %v562_v9, 5 }
 0x296   :  { %v565_v25 = vsub.s32 32, %v564_v30  ;;  %v567_v12 = vshll.u32 %v1367_v36, %v564_v30  ;;  %v570_v13 = vshll.u32 %v1368_v38, %v564_v30  ;;  %v573_v18 = vshll.u32 %v1369_v41, %v564_v30 }
 0x297   :  { %v576_v21 = vshll.u32 %v1370_v44, %v564_v30  ;;  %v579_v23 = vshll.u32 %v1371_v47, %v564_v30  ;;  %vm582_vm11 = vcmp.lt.s32.totalorder %v563_v11, 1  ;;  %vm585_vm12 = vcmp.lt.s32.totalorder %v563_v11, 4 }
 0x298   :  { %v568_v14 = vshrl.u32 %v1368_v38, %v565_v25  ;;  %v571_v15 = vshrl.u32 %v1369_v41, %v565_v25  ;;  %v574_v20 = vshrl.u32 %v1370_v44, %v565_v25  ;;  %v577_v22 = vshrl.u32 %v1371_v47, %v565_v25 }
 0x299   :  { %v580_v24 = vshrl.u32 %v1372_v50, %v565_v25  ;;  %v566_v34 = vshrl.u32 %v1367_v36, %v565_v25  ;;  %vm584_vm13 = vcmp.lt.s32.totalorder %v563_v11, 3  ;;  %vm583_vm14 = vcmp.lt.s32.totalorder %v563_v11, 2 }
 0x29a   :  { %v569_v51 = vor.u32 %v568_v14, %v567_v12  ;;  %v572_v27 = vor.u32 %v571_v15, %v570_v13  ;;  %v575_v43 = vor.u32 %v574_v20, %v573_v18  ;;  %v578_v28 = vor.u32 %v577_v22, %v576_v21 }
 0x29b   :  { %v581_v29 = vor.u32 %v580_v24, %v579_v23 }
 0x29c   :  { %v587_v31 = vsel %vm585_vm12, %v575_v43, 2102212464  ;;  %v590_v32 = vsel %vm582_vm11, %v569_v51, %v572_v27  ;;  %v594_v33 = vsel %vm582_vm11, %v572_v27, %v575_v43  ;;  %v591_v35 = vsel %vm585_vm12, %v578_v28, 920167782 }
 0x29d   :  { %v595_v37 = vsel %vm585_vm12, %v581_v29, 1326507024  ;;  %v592_v39 = vsel %vm584_vm13, %v575_v43, %v591_v35  ;;  %v586_v45 = vsel %vm582_vm11, %v566_v34, %v569_v51  ;;  %v588_v46 = vsel %vm584_vm13, %v572_v27, %v587_v31 }
 0x29e   :  { %v596_v40 = vsel %vm584_vm13, %v578_v28, %v595_v37  ;;  %v593_v48 = vsel %vm583_vm14, %v590_v32, %v592_v39  ;;  %v589_v56 = vsel %vm583_vm14, %v586_v45, %v588_v46 }
 0x29f   :  { %v597_v49 = vsel %vm583_vm14, %v594_v33, %v596_v40  ;;  %v1527_v54 = vmul.u32.u64.low %v598_v42, %v593_v48  ;;  %v1528_v55 = vmul.u32.u64.high %v598_v42, %v593_v48, %v1527_v54  ;;  %v605_v58 = vmul.u32 %v598_v42, %v589_v56 }
 0x2a0   :  { %v1524_v52 = vmul.u32.u64.low %v598_v42, %v597_v49  ;;  %v1525_v53 = vmul.u32.u64.high %v598_v42, %v597_v49, %v1524_v52  ;;  %v667_v48 = vsub.s32 3, %v1421_v17  ;;  %v1173_v49 = vld [vmem:[#allocation2 + $0x30] ss:$0 sm:$0xff] }
 0x2a1   :  { %v608_v57 = vadd.s32 1, %v1528_v55 }
 0x2a2   :  { %vm607_vm15 = vc.u32 %v1525_v53, %v1527_v54  ;;  %v606_v12 = vadd.s32 %v1527_v54, %v1525_v53  ;;  %v668_v53 = vrot.slane %v1424_v19, %v667_v48 }
 0x2a3   :  { %v609_v59 = vsel %vm607_vm15, %v608_v57, %v1528_v55  ;;  %v1174_v55 = vld [vmem:[#allocation2 + $0x31] ss:$0 sm:$0xff] }
 0x2a4   :  { %v610_v60 = vadd.s32 %v609_v59, %v605_v58  ;;  %v1175_v59 = vld [vmem:[#allocation2 + $0x32] ss:$0 sm:$0xff] }
 0x2a6   :  { %v611_v62 = vadd.s32 536870912, %v610_v60 }
 0x2a8   :  { %v612_v63 = vshrl.u32 %v611_v62, 30 }
 0x2aa   :  { %v613_v2 = vshll.u32 %v612_v63, 30  ;;  %v636_v27 = vsub.s32 4, %v612_v63 }
 0x2ac   :  { %v614_v7 = vsub.s32 %v610_v60, %v613_v2  ;;  %v637_v29 = vsel %vm552_vm1, %v636_v27, %v612_v63  ;;  %v1176_v63 = vld [vmem:[#allocation2 + $0x33] ss:$0 sm:$0xff] }
 0x2ad   :  { %v639_v32 = vsel %vm551_vm2, 0, %v637_v29  ;;  %v752_v29 = vsub.s32 4, %v1421_v17 }
 0x2ae   :  { %v616_v9 = vsub.s32 0, %v614_v7  ;;  %v643_v33 = vadd.s32 3, %v639_v32 }
 0x2af   :  { %v753_v32 = vrot.slane %v1424_v19, %v752_v29 }
 0x2b0   :  { %v1170_v30 = vmin.u32 %v616_v9, %v614_v7  ;;  %v644_v34 = vand.u32 3, %v643_v33  ;;  %v1180_v33 = vld [vmem:[#allocation2 + $0x41] ss:$0 sm:$0xff] }
 0x2b2   :  { %v618_v10 = vclz %v1170_v30  ;;  %vm649_vm3 = vcmp.eq.s32.totalorder %v644_v34, 2  ;;  %vm646_vm4 = vcmp.eq.s32.totalorder %v644_v34, 0  ;;  %vm645_vm5 = vcmp.lt.s32.totalorder %v644_v34, 2 }
 0x2b4   :  { %v1171_v25 = vadd.s32 4294967294, %v618_v10  ;;  %v1177_v10 = vld [vmem:[#allocation2 + $0x34] ss:$0 sm:$0xff] }
 0x2b6   :  { %vm1172_vm0 = vcmp.lt.s32.totalorder %v1171_v25, 0 }
 0x2b7   :  { %v621_v11 = vsel %vm1172_vm0, 0, %v1171_v25  ;;  %v1178_v25 = vld [vmem:[#allocation2 + $0x35] ss:$0 sm:$0xff] }
 0x2b8   :  { %v622_v13 = vsub.s32 32, %v621_v11  ;;  %v626_v14 = vsub.s32 4294967266, %v621_v11  ;;  %v623_v15 = vshll.u32 %v614_v7, %v621_v11 }
 0x2ba   :  { %v624_v18 = vshrl.u32 %v606_v12, %v622_v13  ;;  %v627_v20 = vadd.s32 127, %v626_v14 }
 0x2bc   :  { %v625_v21 = vor.u32 %v624_v18, %v623_v15  ;;  %v628_v22 = vshll.u32 %v627_v20, 23 }
 0x2be   :  { %v629_v23 = vor.u32 4788187, %v628_v22  ;;  %v632_v26 = vcvt.s32.f32 %v625_v21 }
 0x2c0   :  { %v630_v24 = vand.u32 2147483647, %v629_v23  ;;  %v1374_v23 = vmov 16  }
 0x2c2   :  { %v633_v51 = vmul.f32 %v632_v26, %v630_v24  ;;  %v1375_v24 = vmov 17  }
 0x2c4   :  { %v634_v43 = vxor.u32 2147483648, %v633_v51 }
 0x2c6   :  { %v635_v28 = vsel %vm552_vm1, %v634_v43, %v633_v51 }
 0x2c7   :  { %v638_v31 = vsel %vm551_vm2, %v1507_v61, %v635_v28  ;;  %v728_v61 = vld [vmem:[%s1643_s1] sm:$0xff]  ;;  %s1376_s1 = smov 126  }
 0x2c8   :  { %1306 = vcosq.f32 %v638_v31 }
 0x2c9   :  { %1308 = vsinq.f32 %v638_v31  ;;  %v1179_v31 = vld [vmem:[#allocation2 + $0x40] ss:$0 sm:$0xff] }
 0x2d2   :  { %v1307_v35 = vpop.eup %1306 }
 0x2d3   :  { %v1309_v37 = vpop.eup %1308  ;;  %v650_v39 = vxor.u32 2147483648, %v1307_v35 }
 0x2d4   :  { %v647_v40 = vxor.u32 2147483648, %v1309_v37 }
 0x2d5   :  { %v651_v42 = vsel %vm649_vm3, %v650_v39, %v1309_v37 }
 0x2d6   :  { %v648_v45 = vsel %vm646_vm4, %v1307_v35, %v647_v40 }
 0x2d7   :  { %v652_v8 = vsel %vm645_vm5, %v648_v45, %v651_v42 }
 0x2d8   :  { %v653_v46 = vsel %vm642_vm6, nan, %v652_v8 }
 0x2d9   :  { %683 = vperm.xlu0 %1279, %v653_v46   ;;  %657 = vperm.xlu1 %1277, %v653_v46  }
 0x2dd   :  { %1282 = vset.pattern.permute.xlu0 %v1357_v6  ;;  %1278 = vset.pattern.permute.xlu1 %v1355_v4 }
 0x2de   :  { %716 = vperm.xlu0 %1282, %v653_v46   ;;  %672 = vperm.xlu1 %1278, %v653_v46  }
 0x2e2   :  { %1280 = vset.pattern.permute.xlu1 %v1354_v3  ;;  %1283 = vset.pattern.permute.xlu0 %v1374_v23 }
 0x2e3   :  { %694 = vperm.xlu1 %1280, %v653_v46  }
 0x2e7   :  { %1281 = vset.pattern.permute.xlu1 %v1356_v5 }
 0x2e8   :  { %705 = vperm.xlu1 %1281, %v653_v46  }
 0x2ec   :  { %730 = vrot.lane.b32.xlu1 %v728_v61, %s1373_s28 }
 0x2ed   :  { %1284 = vset.pattern.permute.xlu1 %v1375_v24 }
 0x358   :  { %v658_v52 = vpop.permute.xlu1 %657  ;;  %v684_v60 = vpop.permute.xlu0 %683 }
 0x359   :  { %v664_v54 = vmul.f32 %v1173_v49, %v658_v52  ;;  %v690_v2 = vmul.f32 %v1175_v59, %v684_v60 }
 0x35b   :  { %v669_v57 = vadd.f32 %v668_v53, %v664_v54 }
 0x35d   :  { %v673_v56 = vpop.permute.xlu1 %672  ;;  %v717_v11 = vpop.permute.xlu0 %716 }
 0x35e   :  { %v679_v58 = vmul.f32 %v1174_v55, %v673_v56  ;;  %v723_v15 = vmul.f32 %v1178_v25, %v717_v11 }
 0x360   :  { %v680_v62 = vadd.f32 %v679_v58, %v669_v57 }
 0x362   :  { %v695_v7 = vpop.permute.xlu1 %694  ;;  %v691_v9 = vadd.f32 %v690_v2, %v680_v62 }
 0x363   :  { %v701_v30 = vmul.f32 %v1176_v63, %v695_v7 }
 0x365   :  { %v702_v13 = vadd.f32 %v701_v30, %v691_v9 }
 0x367   :  { %v706_v12 = vpop.permute.xlu1 %705 }
 0x368   :  { %v712_v14 = vmul.f32 %v1177_v10, %v706_v12 }
 0x36a   :  { %v713_v18 = vadd.f32 %v712_v14, %v702_v13 }
 0x36b   :  { %v731_v26 = vpop.permute.xlu1 %730 }
 0x36c   :  { %v1548_v20 = vadd.f32 %v723_v15, %v713_v18 }
 0x36e   :  { %v725_v21 = vmul.f32 0.5, %v1548_v20 }
 0x370   :  { %v726_v22 = vmul.f32 1.442695, %v725_v21 }
 0x372   :  { %1310 = vpow2.f32 %v726_v22 }
 0x37c   :  { %v1311_v51 = vpop.eup %1310 }
 0x37d   :  { %v733_v27 = vmul.f32 %v1311_v51, %v731_v26 }
 0x37f   :  { %735 = vrot.lane.b32.xlu1 %v733_v27, %s1376_s1 }
 0x3f1   :  { %v736_v43 = vpop.permute.xlu1 %735 }
 0x3f2   :  { %v738_v28 = vadd.f32 %v736_v43, %v1548_v20 }
 0x3f4   :  { %757 = vperm.xlu1 %1284, %v738_v28   ;;  %742 = vperm.xlu0 %1283, %v738_v28  }
 0x3f8   :  { %1285 = vset.pattern.permute.xlu1 %v1353_v1  ;;  %1286 = vset.pattern.permute.xlu0 %v1355_v4 }
 0x473   :  { %v758_v34 = vpop.permute.xlu1 %757  ;;  %v743_v35 = vpop.permute.xlu0 %742 }
 0x474   :  { %v749_v37 = vmul.f32 %v1179_v31, %v743_v35  ;;  %v764_v39 = vmul.f32 %v1180_v33, %v758_v34 }
 0x476   :  { %v754_v40 = vadd.f32 %v753_v32, %v749_v37 }
 0x478   :  { %v1556_v42 = vadd.f32 %v764_v39, %v754_v40 }
 0x47a   :  { %v769_v45 = vand.u32 2139095040, %v1556_v42  ;;  %v766_v48 = vand.u32 2147483647, %v1556_v42  ;;  %vm768_vm14 = vcmp.lt.s32.totalorder %v1556_v42, 0  ;;  %vm858_vm3 = vweird.f32 %v1556_v42 }
 0x47c   :  { %v770_v8 = vshrl.u32 %v769_v45, 23  ;;  %v773_v19 = vand.u32 8388607, %v766_v48  ;;  %vm767_vm15 = vcmp.le.f32.partialorder %v766_v48, 0.7853982 }
 0x47e   :  { %v1181_v46 = vadd.s32 4294967169, %v770_v8  ;;  %v774_v9 = vor.u32 8388608, %v773_v19 }
 0x480   :  { %v776_v61 = vadd.s32 1, %v1181_v46  ;;  %v814_v26 = vshll.u32 %v774_v9, 8 }
 0x482   :  { %vm777_vm7 = vcmp.gt.s32.totalorder %v776_v61, 0 }
 0x483   :  { %v778_v49 = vsel %vm777_vm7, %v776_v61, 0 }
 0x484   :  { %v780_v52 = vand.u32 31, %v778_v49  ;;  %v779_v54 = vshrl.u32 %v778_v49, 5 }
 0x486   :  { %v781_v53 = vsub.s32 32, %v780_v52  ;;  %v783_v55 = vshll.u32 %v1367_v36, %v780_v52  ;;  %v786_v56 = vshll.u32 %v1368_v38, %v780_v52  ;;  %v789_v59 = vshll.u32 %v1369_v41, %v780_v52 }
 0x487   :  { %v792_v62 = vshll.u32 %v1370_v44, %v780_v52  ;;  %v795_v2 = vshll.u32 %v1371_v47, %v780_v52  ;;  %vm798_vm8 = vcmp.lt.s32.totalorder %v779_v54, 1  ;;  %vm801_vm9 = vcmp.lt.s32.totalorder %v779_v54, 4 }
 0x488   :  { %v784_v57 = vshrl.u32 %v1368_v38, %v781_v53  ;;  %v787_v58 = vshrl.u32 %v1369_v41, %v781_v53  ;;  %v790_v60 = vshrl.u32 %v1370_v44, %v781_v53  ;;  %v793_v63 = vshrl.u32 %v1371_v47, %v781_v53 }
 0x489   :  { %v796_v7 = vshrl.u32 %v1372_v50, %v781_v53  ;;  %v782_v18 = vshrl.u32 %v1367_v36, %v781_v53  ;;  %vm800_vm10 = vcmp.lt.s32.totalorder %v779_v54, 3  ;;  %vm799_vm11 = vcmp.lt.s32.totalorder %v779_v54, 2 }
 0x48a   :  { %v785_v30 = vor.u32 %v784_v57, %v783_v55  ;;  %v788_v10 = vor.u32 %v787_v58, %v786_v56  ;;  %v791_v25 = vor.u32 %v790_v60, %v789_v59  ;;  %v794_v11 = vor.u32 %v793_v63, %v792_v62 }
 0x48b   :  { %v797_v12 = vor.u32 %v796_v7, %v795_v2 }
 0x48c   :  { %v803_v13 = vsel %vm801_vm9, %v791_v25, 2102212464  ;;  %v806_v14 = vsel %vm798_vm8, %v785_v30, %v788_v10  ;;  %v810_v15 = vsel %vm798_vm8, %v788_v10, %v791_v25  ;;  %v807_v21 = vsel %vm801_vm9, %v794_v11, 920167782 }
 0x48d   :  { %v811_v22 = vsel %vm801_vm9, %v797_v12, 1326507024  ;;  %v808_v23 = vsel %vm800_vm10, %v791_v25, %v807_v21  ;;  %v802_v51 = vsel %vm798_vm8, %v782_v18, %v785_v30  ;;  %v804_v27 = vsel %vm800_vm10, %v788_v10, %v803_v13 }
 0x48e   :  { %v812_v24 = vsel %vm800_vm10, %v794_v11, %v811_v22  ;;  %v809_v43 = vsel %vm799_vm11, %v806_v14, %v808_v23  ;;  %v805_v34 = vsel %vm799_vm11, %v802_v51, %v804_v27 }
 0x48f   :  { %v813_v28 = vsel %vm799_vm11, %v810_v15, %v812_v24  ;;  %v1576_v32 = vmul.u32.u64.low %v814_v26, %v809_v43  ;;  %v1577_v33 = vmul.u32.u64.high %v814_v26, %v809_v43, %v1576_v32  ;;  %v821_v37 = vmul.u32 %v814_v26, %v805_v34  ;;  %v1185_v43 = vld [vmem:[#allocation2 + $0x50] ss:$0 sm:$0xff] }
 0x490   :  { %v1573_v29 = vmul.u32.u64.low %v814_v26, %v813_v28  ;;  %v1574_v31 = vmul.u32.u64.high %v814_v26, %v813_v28, %v1573_v29  ;;  %v1595_v28 = vld [vmem:[#allocation2 + $0x70] sm:$0xff] }
 0x491   :  { %v824_v35 = vadd.s32 1, %v1577_v33 }
 0x492   :  { %vm823_vm12 = vc.u32 %v1574_v31, %v1576_v32  ;;  %v822_v55 = vadd.s32 %v1576_v32, %v1574_v31 }
 0x493   :  { %v825_v39 = vsel %vm823_vm12, %v824_v35, %v1577_v33  ;;  %v1186_v33 = vld [vmem:[#allocation2 + $0x51] ss:$0 sm:$0xff] }
 0x494   :  { %v826_v40 = vadd.s32 %v825_v39, %v821_v37  ;;  %v1187_v37 = vld [vmem:[#allocation2 + $0x52] ss:$0 sm:$0xff] }
 0x496   :  { %v827_v45 = vadd.s32 536870912, %v826_v40 }
 0x498   :  { %v828_v8 = vshrl.u32 %v827_v45, 30 }
 0x49a   :  { %v829_v46 = vshll.u32 %v828_v8, 30  ;;  %v852_v10 = vsub.s32 4, %v828_v8 }
 0x49c   :  { %v830_v61 = vsub.s32 %v826_v40, %v829_v46  ;;  %v853_v12 = vsel %vm768_vm14, %v852_v10, %v828_v8  ;;  %v1188_v8 = vld [vmem:[#allocation2 + $0x53] ss:$0 sm:$0xff]  ;;  %v1189_v46 = vld [vmem:[#allocation2 + $0x54] ss:$0 sm:$0xff] }
 0x49d   :  { %v855_v14 = vsel %vm767_vm15, 0, %v853_v12 }
 0x49e   :  { %v832_v49 = vsub.s32 0, %v830_v61  ;;  %v859_v15 = vadd.s32 3, %v855_v14 }
 0x4a0   :  { %v1182_v52 = vmin.u32 %v832_v49, %v830_v61  ;;  %v860_v18 = vand.u32 3, %v859_v15 }
 0x4a2   :  { %v834_v19 = vclz %v1182_v52  ;;  %vm865_vm0 = vcmp.eq.s32.totalorder %v860_v18, 2  ;;  %vm862_vm1 = vcmp.eq.s32.totalorder %v860_v18, 0  ;;  %vm861_vm2 = vcmp.lt.s32.totalorder %v860_v18, 2 }
 0x4a4   :  { %v1183_v53 = vadd.s32 4294967294, %v834_v19 }
 0x4a6   :  { %vm1184_vm13 = vcmp.lt.s32.totalorder %v1183_v53, 0 }
 0x4a7   :  { %v837_v54 = vsel %vm1184_vm13, 0, %v1183_v53 }
 0x4a8   :  { %v838_v56 = vsub.s32 32, %v837_v54  ;;  %v842_v57 = vsub.s32 4294967266, %v837_v54  ;;  %v839_v58 = vshll.u32 %v830_v61, %v837_v54  ;;  %v1190_v54 = vld [vmem:[#allocation2 + $0x55] ss:$0 sm:$0xff] }
 0x4aa   :  { %v840_v59 = vshrl.u32 %v822_v55, %v838_v56  ;;  %v843_v60 = vadd.s32 127, %v842_v57 }
 0x4ac   :  { %v841_v62 = vor.u32 %v840_v59, %v839_v58  ;;  %v844_v63 = vshll.u32 %v843_v60, 23 }
 0x4ae   :  { %v845_v2 = vor.u32 4788187, %v844_v63  ;;  %v848_v9 = vcvt.s32.f32 %v841_v62 }
 0x4b0   :  { %v846_v7 = vand.u32 2147483647, %v845_v2 }
 0x4b2   :  { %v849_v30 = vmul.f32 %v848_v9, %v846_v7 }
 0x4b4   :  { %v850_v25 = vxor.u32 2147483648, %v849_v30 }
 0x4b6   :  { %v851_v11 = vsel %vm768_vm14, %v850_v25, %v849_v30 }
 0x4b7   :  { %v854_v13 = vsel %vm767_vm15, %v1556_v42, %v851_v11  ;;  %v883_v42 = vsub.s32 5, %v1421_v17 }
 0x4b8   :  { %1312 = vcosq.f32 %v854_v13 }
 0x4b9   :  { %1314 = vsinq.f32 %v854_v13  ;;  %v884_v29 = vrot.slane %v1595_v28, %v883_v42 }
 0x4c2   :  { %v1313_v21 = vpop.eup %1312 }
 0x4c3   :  { %v1315_v22 = vpop.eup %1314  ;;  %v866_v23 = vxor.u32 2147483648, %v1313_v21 }
 0x4c4   :  { %v863_v24 = vxor.u32 2147483648, %v1315_v22 }
 0x4c5   :  { %v867_v26 = vsel %vm865_vm0, %v866_v23, %v1315_v22 }
 0x4c6   :  { %v864_v51 = vsel %vm862_vm1, %v1313_v21, %v863_v24 }
 0x4c7   :  { %v868_v48 = vsel %vm861_vm2, %v864_v51, %v867_v26 }
 0x4c8   :  { %v869_v27 = vsel %vm858_vm3, nan, %v868_v48 }
 0x4c9   :  { %888 = vperm.xlu0 %1286, %v869_v27   ;;  %873 = vperm.xlu1 %1285, %v869_v27  }
 0x4cd   :  { %1289 = vset.pattern.permute.xlu0 %v1356_v5  ;;  %1287 = vset.pattern.permute.xlu1 %v1352_v0 }
 0x4ce   :  { %921 = vperm.xlu0 %1289, %v869_v27   ;;  %899 = vperm.xlu1 %1287, %v869_v27  }
 0x4d2   :  { %1288 = vset.pattern.permute.xlu1 %v1354_v3  ;;  %1292 = vset.pattern.permute.xlu0 %v1355_v4 }
 0x4d3   :  { %910 = vperm.xlu1 %1288, %v869_v27  }
 0x4d7   :  { %1290 = vset.pattern.permute.xlu1 %v1357_v6 }
 0x4d8   :  { %932 = vperm.xlu1 %1290, %v869_v27  }
 0x4dc   :  { %1291 = vset.pattern.permute.xlu1 %v1353_v1 }
 0x548   :  { %v874_v31 = vpop.permute.xlu1 %873  ;;  %v889_v34 = vpop.permute.xlu0 %888 }
 0x549   :  { %v880_v32 = vmul.f32 %v1185_v43, %v874_v31  ;;  %v895_v4 = vmul.f32 %v1186_v33, %v889_v34 }
 0x54b   :  { %v885_v35 = vadd.f32 %v884_v29, %v880_v32 }
 0x54d   :  { %v900_v39 = vpop.permute.xlu1 %899  ;;  %v896_v40 = vadd.f32 %v895_v4, %v885_v35  ;;  %v922_v1 = vpop.permute.xlu0 %921 }
 0x54e   :  { %v906_v45 = vmul.f32 %v1187_v37, %v900_v39  ;;  %v928_v19 = vmul.f32 %v1189_v46, %v922_v1 }
 0x550   :  { %v907_v49 = vadd.f32 %v906_v45, %v896_v40 }
 0x552   :  { %v911_v61 = vpop.permute.xlu1 %910 }
 0x553   :  { %v917_v52 = vmul.f32 %v1188_v8, %v911_v61 }
 0x555   :  { %v918_v53 = vadd.f32 %v917_v52, %v907_v49 }
 0x557   :  { %v929_v55 = vadd.f32 %v928_v19, %v918_v53  ;;  %v933_v56 = vpop.permute.xlu1 %932 }
 0x558   :  { %v939_v57 = vmul.f32 %v1190_v54, %v933_v56 }
 0x55a   :  { %v1598_v58 = vadd.f32 %v939_v57, %v929_v55 }
 0x55c   :  { %v944_v59 = vand.u32 2139095040, %v1598_v58  ;;  %v941_v2 = vand.u32 2147483647, %v1598_v58  ;;  %vm943_vm11 = vcmp.lt.s32.totalorder %v1598_v58, 0  ;;  %vm1033_vm0 = vweird.f32 %v1598_v58 }
 0x55e   :  { %v945_v60 = vshrl.u32 %v944_v59, 23  ;;  %v948_v30 = vand.u32 8388607, %v941_v2  ;;  %vm942_vm12 = vcmp.le.f32.partialorder %v941_v2, 0.7853982 }
 0x560   :  { %v1191_v62 = vadd.s32 4294967169, %v945_v60  ;;  %v949_v26 = vor.u32 8388608, %v948_v30 }
 0x562   :  { %v951_v63 = vadd.s32 1, %v1191_v62 }
 0x564   :  { %vm952_vm4 = vcmp.gt.s32.totalorder %v951_v63, 0 }
 0x565   :  { %v953_v7 = vsel %vm952_vm4, %v951_v63, 0 }
 0x566   :  { %v955_v9 = vand.u32 31, %v953_v7  ;;  %v954_v25 = vshrl.u32 %v953_v7, 5 }
 0x568   :  { %v956_v10 = vsub.s32 32, %v955_v9  ;;  %v958_v11 = vshll.u32 %v1367_v36, %v955_v9  ;;  %v961_v12 = vshll.u32 %v1368_v38, %v955_v9  ;;  %v964_v15 = vshll.u32 %v1369_v41, %v955_v9 }
 0x569   :  { %v967_v21 = vshll.u32 %v1370_v44, %v955_v9  ;;  %v970_v23 = vshll.u32 %v1371_v47, %v955_v9  ;;  %vm973_vm5 = vcmp.lt.s32.totalorder %v954_v25, 1  ;;  %vm976_vm6 = vcmp.lt.s32.totalorder %v954_v25, 4 }
 0x56a   :  { %v959_v13 = vshrl.u32 %v1368_v38, %v956_v10  ;;  %v962_v14 = vshrl.u32 %v1369_v41, %v956_v10  ;;  %v965_v18 = vshrl.u32 %v1370_v44, %v956_v10  ;;  %v968_v22 = vshrl.u32 %v1371_v47, %v956_v10 }
 0x56b   :  { %v971_v24 = vshrl.u32 %v1372_v50, %v956_v10  ;;  %v957_v31 = vshrl.u32 %v1367_v36, %v956_v10  ;;  %vm975_vm7 = vcmp.lt.s32.totalorder %v954_v25, 3  ;;  %vm974_vm8 = vcmp.lt.s32.totalorder %v954_v25, 2 }
 0x56c   :  { %v960_v51 = vor.u32 %v959_v13, %v958_v11  ;;  %v963_v48 = vor.u32 %v962_v14, %v961_v12  ;;  %v966_v27 = vor.u32 %v965_v18, %v964_v15  ;;  %v969_v42 = vor.u32 %v968_v22, %v967_v21 }
 0x56d   :  { %v972_v38 = vor.u32 %v971_v24, %v970_v23  ;;  %v989_v50 = vshll.u32 %v949_v26, 8 }
 0x56e   :  { %v978_v43 = vsel %vm976_vm6, %v966_v27, 2102212464  ;;  %v981_v41 = vsel %vm973_vm5, %v960_v51, %v963_v48  ;;  %v985_v29 = vsel %vm973_vm5, %v963_v48, %v966_v27  ;;  %v982_v44 = vsel %vm976_vm6, %v969_v42, 920167782 }
 0x56f   :  { %v986_v32 = vsel %vm976_vm6, %v972_v38, 1326507024  ;;  %v983_v47 = vsel %vm975_vm7, %v966_v27, %v982_v44  ;;  %v977_v34 = vsel %vm973_vm5, %v957_v31, %v960_v51  ;;  %v979_v35 = vsel %vm975_vm7, %v963_v48, %v978_v43  ;;  %v1195_v44 = vld [vmem:[#allocation2 + $0x60] ss:$0 sm:$0xff] }
 0x570   :  { %v987_v33 = vsel %vm975_vm7, %v969_v42, %v986_v32  ;;  %v984_v37 = vsel %vm974_vm8, %v981_v41, %v983_v47  ;;  %v980_v46 = vsel %vm974_vm8, %v977_v34, %v979_v35  ;;  %v1197_v34 = vld [vmem:[#allocation2 + $0x62] ss:$0 sm:$0xff] }
 0x571   :  { %v988_v4 = vsel %vm974_vm8, %v985_v29, %v987_v33  ;;  %v1618_v45 = vmul.u32.u64.low %v989_v50, %v984_v37  ;;  %v1619_v8 = vmul.u32.u64.high %v989_v50, %v984_v37, %v1618_v45  ;;  %v996_v1 = vmul.u32 %v989_v50, %v980_v46 }
 0x572   :  { %v1615_v39 = vmul.u32.u64.low %v989_v50, %v988_v4  ;;  %v1616_v40 = vmul.u32.u64.high %v989_v50, %v988_v4, %v1615_v39 }
 0x573   :  { %v999_v36 = vadd.s32 1, %v1619_v8  ;;  %v1198_v39 = vld [vmem:[#allocation2 + $0x63] ss:$0 sm:$0xff] }
 0x574   :  { %vm998_vm9 = vc.u32 %v1616_v40, %v1618_v45  ;;  %v997_v62 = vadd.s32 %v1618_v45, %v1616_v40  ;;  %v1199_v40 = vld [vmem:[#allocation2 + $0x64] ss:$0 sm:$0xff] }
 0x575   :  { %v1000_v61 = vsel %vm998_vm9, %v999_v36, %v1619_v8 }
 0x576   :  { %v1001_v49 = vadd.s32 %v1000_v61, %v996_v1  ;;  %v1200_v1 = vld [vmem:[#allocation2 + $0x65] ss:$0 sm:$0xff] }
 0x578   :  { %v1002_v52 = vadd.s32 536870912, %v1001_v49 }
 0x57a   :  { %v1003_v19 = vshrl.u32 %v1002_v52, 30 }
 0x57c   :  { %v1004_v53 = vshll.u32 %v1003_v19, 30  ;;  %v1027_v18 = vsub.s32 4, %v1003_v19 }
 0x57e   :  { %v1005_v54 = vsub.s32 %v1001_v49, %v1004_v53  ;;  %v1028_v23 = vsel %vm943_vm11, %v1027_v18, %v1003_v19 }
 0x57f   :  { %v1030_v26 = vsel %vm942_vm12, 0, %v1028_v23 }
 0x580   :  { %v1007_v55 = vsub.s32 0, %v1005_v54  ;;  %v1034_v51 = vadd.s32 3, %v1030_v26 }
 0x582   :  { %v1192_v56 = vmin.u32 %v1007_v55, %v1005_v54  ;;  %v1035_v48 = vand.u32 3, %v1034_v51  ;;  %v1123_v55 = vand.u32 127, %v41_v16 }
 0x584   :  { %v1009_v57 = vclz %v1192_v56  ;;  %vm1040_vm13 = vcmp.eq.s32.totalorder %v1035_v48, 2  ;;  %vm1037_vm14 = vcmp.eq.s32.totalorder %v1035_v48, 0  ;;  %vm1036_vm15 = vcmp.lt.s32.totalorder %v1035_v48, 2 }
 0x585   :  { %vm1124_vm1 = vcmp.ge.s32.totalorder %v1123_v55, 16  ;;  %vm1125_vm2 = vcmp.lt.s32.totalorder %v1123_v55, 20 }
 0x586   :  { %v1193_v59 = vadd.s32 4294967294, %v1009_v57  ;;  %vm1126_vm3 = vmand %vm1124_vm1, %vm1125_vm2 }
 0x588   :  { %vm1194_vm10 = vcmp.lt.s32.totalorder %v1193_v59, 0 }
 0x589   :  { %v1012_v60 = vsel %vm1194_vm10, 0, %v1193_v59 }
 0x58a   :  { %v1013_v63 = vsub.s32 32, %v1012_v60  ;;  %v1017_v7 = vsub.s32 4294967266, %v1012_v60  ;;  %v1014_v9 = vshll.u32 %v1005_v54, %v1012_v60 }
 0x58c   :  { %v1015_v30 = vshrl.u32 %v997_v62, %v1013_v63  ;;  %v1018_v10 = vadd.s32 127, %v1017_v7 }
 0x58e   :  { %v1016_v25 = vor.u32 %v1015_v30, %v1014_v9  ;;  %v1019_v11 = vshll.u32 %v1018_v10, 23 }
 0x590   :  { %v1020_v12 = vor.u32 4788187, %v1019_v11  ;;  %v1023_v14 = vcvt.s32.f32 %v1016_v25 }
 0x592   :  { %v1021_v13 = vand.u32 2147483647, %v1020_v12 }
 0x594   :  { %v1024_v15 = vmul.f32 %v1023_v14, %v1021_v13 }
 0x596   :  { %v1025_v21 = vxor.u32 2147483648, %v1024_v15 }
 0x598   :  { %v1026_v22 = vsel %vm943_vm11, %v1025_v21, %v1024_v15 }
 0x599   :  { %v1029_v24 = vsel %vm942_vm12, %v1598_v58, %v1026_v22  ;;  %v1058_v58 = vsub.s32 6, %v1421_v17 }
 0x59a   :  { %1316 = vcosq.f32 %v1029_v24 }
 0x59b   :  { %1318 = vsinq.f32 %v1029_v24  ;;  %v1059_v32 = vrot.slane %v1595_v28, %v1058_v58 }
 0x5a4   :  { %v1317_v27 = vpop.eup %1316 }
 0x5a5   :  { %v1319_v42 = vpop.eup %1318  ;;  %v1041_v38 = vxor.u32 2147483648, %v1317_v27 }
 0x5a6   :  { %v1038_v43 = vxor.u32 2147483648, %v1319_v42 }
 0x5a7   :  { %v1042_v41 = vsel %vm1040_vm13, %v1041_v38, %v1319_v42 }
 0x5a8   :  { %v1039_v29 = vsel %vm1037_vm14, %v1317_v27, %v1038_v43 }
 0x5a9   :  { %v1043_v2 = vsel %vm1036_vm15, %v1039_v29, %v1042_v41 }
 0x5aa   :  { %v1044_v31 = vsel %vm1033_vm0, nan, %v1043_v2 }
 0x5ab   :  { %1063 = vperm.xlu0 %1292, %v1044_v31   ;;  %1048 = vperm.xlu1 %1291, %v1044_v31  }
 0x5af   :  { %1295 = vset.pattern.permute.xlu0 %v1356_v5  ;;  %1293 = vset.pattern.permute.xlu1 %v1352_v0  ;;  %v1196_v5 = vld [vmem:[#allocation2 + $0x61] ss:$0 sm:$0xff] }
 0x5b0   :  { %1096 = vperm.xlu0 %1295, %v1044_v31   ;;  %1074 = vperm.xlu1 %1293, %v1044_v31  }
 0x5b4   :  { %1294 = vset.pattern.permute.xlu1 %v1354_v3  ;;  %1297 = vset.pattern.permute.xlu0 %v1357_v6 }
 0x5b5   :  { %1085 = vperm.xlu1 %1294, %v1044_v31  }
 0x5b9   :  { %1296 = vset.pattern.permute.xlu1 %v1357_v6 }
 0x5ba   :  { %1107 = vperm.xlu1 %1296, %v1044_v31  }
 0x62a   :  { %v1049_v47 = vpop.permute.xlu1 %1048  ;;  %v1064_v50 = vpop.permute.xlu0 %1063 }
 0x62b   :  { %v1055_v33 = vmul.f32 %v1195_v44, %v1049_v47  ;;  %v1070_v35 = vmul.f32 %v1196_v5, %v1064_v50 }
 0x62d   :  { %v1060_v0 = vadd.f32 %v1059_v32, %v1055_v33 }
 0x62f   :  { %v1075_v37 = vpop.permute.xlu1 %1074  ;;  %v1071_v3 = vadd.f32 %v1070_v35, %v1060_v0  ;;  %v1097_v45 = vpop.permute.xlu0 %1096 }
 0x630   :  { %v1081_v4 = vmul.f32 %v1197_v34, %v1075_v37  ;;  %v1103_v17 = vmul.f32 %v1199_v40, %v1097_v45 }
 0x632   :  { %v1082_v8 = vadd.f32 %v1081_v4, %v1071_v3 }
 0x634   :  { %v1086_v6 = vpop.permute.xlu1 %1085 }
 0x635   :  { %v1092_v46 = vmul.f32 %v1198_v39, %v1086_v6 }
 0x637   :  { %v1093_v36 = vadd.f32 %v1092_v46, %v1082_v8 }
 0x639   :  { %v1104_v28 = vadd.f32 %v1103_v17, %v1093_v36  ;;  %v1108_v61 = vpop.permute.xlu1 %1107 }
 0x63a   :  { %v1114_v49 = vmul.f32 %v1200_v1, %v1108_v61 }
 0x63c   :  { %v1115_v52 = vadd.f32 %v1114_v49, %v1104_v28 }
 0x63e   :  { %v1201_v19 = vmul.f32 -1.442695, %v1115_v52 }
 0x640   :  { %1320 = vpow2.f32 %v1201_v19 }
 0x64a   :  { %v1321_v53 = vpop.eup %1320 }
 0x64b   :  { %v1119_v54 = vadd.f32 1.0, %v1321_v53 }
 0x64d   :  { %1322 = vrcp.f32 %v1119_v54 }
 0x657   :  { %v1323_v56 = vpop.eup %1322 }
 0x658   :  { %v1127_v57 = vsel %vm1126_vm3, %v1548_v20, %v1323_v56 }
 0x659   :  { %1128 = vst [vmem:[%s1645_s3] sm:$0xff] %v1127_v57 }
 0x65a   :  { %1133 = vsyncpa [#allocation3], 1 }

</bundles_post_ra>
